<compile_context>
chip_gen: v6e
topology: v6e:2x2x1
jax: 0.10.0
libtpu: 0.0.40
codegen_flags: <defaults>
</compile_context>

<pallas_src>
import functools
import numpy as np

import jax
import jax.numpy as jnp
from jax import lax
from jax.experimental import pallas as pl
from jax.experimental.pallas import tpu as pltpu

_BN_EPS = 1e-5


# ----------------------------------------------------------------------------
# Generation-aware VMEM budgets
# ----------------------------------------------------------------------------
@functools.lru_cache(maxsize=1)
def _vmem_budgets():
    """(vmem_limit_bytes, band_budget, tile_budget) scaled to this TPU's VMEM."""
    vmem = 64 << 20                     # conservative fallback (v7x per-TC VMEM)
    try:
        vmem = int(pltpu.get_tpu_info().vmem_capacity_bytes)
    except Exception:                   # non-TPU backend / older API surface
        pass
    vmem_limit = int(min(vmem // 2, 64 << 20))        # 64 MiB v5e/v6e, 32 MiB v7x
    band_budget = int(min(max(vmem // 8, 4 << 20), 24 << 20))
    tile_budget = int(min(max(vmem // 6, 6 << 20), 24 << 20))
    return vmem_limit, band_budget, tile_budget


# ----------------------------------------------------------------------------
# Pallas kernels
# ----------------------------------------------------------------------------
def _patch_matmul_kernel(a_ref, w_ref, o_ref):
    """Plain bf16 matmul on pre-normalized im2col patches (f32 accumulate)."""
    o_ref[...] = jnp.dot(a_ref[...], w_ref[...],
                         preferred_element_type=jnp.float32)


def _conv2d_s1_kernel(x_ref, sc_ref, sh_ref, w_ref, o_ref, *,
                      band_out, out_w, kh, kw, cin, apply_relu):
    """Stride-1 2-D conv on a halo'd row band, BN+ReLU fused (once per element).

    x_ref : (band_out + kh - 1, wp, cin) f32 raw rows (mean-padded borders)
    sc/sh : (1, 1, cin) f32 BN scale / shift (mean-padded entries -> exactly 0)
    w_ref : (kh*kw*cin, cout) bf16 ;  o_ref : (band_out*out_w, cout) f32
    """
    xb = x_ref[...] * sc_ref[...] + sh_ref[...]      # BN once per input element
    if apply_relu:
        xb = jnp.maximum(xb, 0.0)
    xb = xb.astype(jnp.bfloat16)
    m = band_out * out_w
    cout = o_ref.shape[-1]
    acc = jnp.zeros((m, cout), jnp.float32)
    for dh in range(kh):                 # kh*kw MXU dots accumulated in registers
        for dw in range(kw):
            # out_w is a multiple of 8 -> this flatten is a pure vreg relabel.
            a = xb[dh:dh + band_out, dw:dw + out_w, :].reshape(m, cin)
            col = (dh * kw + dw) * cin
            acc = acc + jnp.dot(a, w_ref[col:col + cin, :],
                                preferred_element_type=jnp.float32)
    o_ref[...] = acc


# ----------------------------------------------------------------------------
# Helpers
# ----------------------------------------------------------------------------
def _tup(v, n):
    return (v,) * n if isinstance(v, int) else tuple(v)


def _cdiv(a, b):
    return -(-a // b)


def _mean_pad(x, pads, mean):
    """Pad spatial dims of channels-last x with the per-channel mean.

    The fused in-kernel BN maps these padded entries to exactly 0, which matches
    PyTorch's zero padding applied *after* BN+ReLU.
    """
    if all(lo == 0 and hi == 0 for lo, hi in pads):
        return x
    n, c = x.shape[0], x.shape[-1]
    sp = tuple(s + lo + hi for s, (lo, hi) in zip(x.shape[1:-1], pads))
    full = jnp.broadcast_to(mean.reshape((1,) * (x.ndim - 1) + (c,)),
                            (n,) + sp + (c,))
    idx = ((slice(None),)
           + tuple(slice(lo, lo + s)
                   for s, (lo, _) in zip(x.shape[1:-1], pads))
           + (slice(None),))
    return full.at[idx].set(x)


def _pick_tile_m(m, k, cout, budget):
    """VMEM-aware M tile; keeps >=2 grid steps when the problem allows (v7x)."""
    per_row = 2 * 2 * k + 2 * 4 * cout + 2 * k + 4 * cout   # db A(bf16)+out(f32)+temps
    tm = max(8, budget // max(per_row, 1))
    tm = min(tm, 1 << 14)
    tm = (tm // 8) * 8
    m8 = _cdiv(m, 8) * 8
    tm = min(tm, m8)
    if _cdiv(m8, tm) < 2 and m8 >= 16:
        tm = max(8, ((m8 // 2) // 8) * 8)
    return tm


# ----------------------------------------------------------------------------
# Convolution paths
# ----------------------------------------------------------------------------
def _conv_pallas_2d_s1(xp, w2, scale, shift, mean, kh, kw, cin, cout,
                       apply_relu, budgets):
    """Stride-1 2-D conv; taps gathered in-kernel from halo'd row bands."""
    vmem_limit, band_budget, _ = budgets
    n, hp, wp, _ = xp.shape
    out_h = hp - kh + 1
    out_w = wp - kw + 1
    K = kh * kw * cin

    # Pad out_w to a multiple of 8 (mean columns -> 0 post-BN; extra output
    # columns are sliced off) so in-kernel flattens are free relabels.
    out_w_p = max(8, _cdiv(out_w, 8) * 8)
    wp_p = out_w_p + kw - 1

    def band_bytes(b):
        bi = b + kh - 1
        return (2 * bi * wp_p * cin * 4         # double-buffered f32 input band
                + 2 * bi * wp_p * cin * 2       # bf16 normalized copy + slices
                + 2 * b * out_w_p * cin * 2     # per-tap A temporaries
                + 4 * b * out_w_p * cout * 4    # acc + dot temp + db output
                + 2 * K * cout * 2)             # weights

    band = 1
    for b in range(out_h, 0, -1):
        if band_bytes(b) <= band_budget:
            band = b
            break
    nb = _cdiv(out_h, band)
    band = _cdiv(out_h, nb)                     # rebalance bands (non-divisor ok)
    if n * nb < 2 and out_h >= 2:               # keep >=2 parallel steps (v7x)
        nb = 2
        band = _cdiv(out_h, nb)
    out_h_p = nb * band
    band_in = band + kh - 1
    hp_need = out_h_p + kh - 1
    xp = _mean_pad(xp, ((0, hp_need - hp), (0, wp_p - wp)), mean)

    if nb == 1:
        xb = xp[:, None]                        # free reshape, no HBM copy
    else:
        # TODO(synk): use a pl.Element row-offset BlockSpec so Pallas DMAs the
        # overlapping halo windows straight from xp instead of this band stack.
        xb = jnp.stack([xp[:, j * band:j * band + band_in] for j in range(nb)],
                       axis=1)

    out = pl.pallas_call(
        functools.partial(_conv2d_s1_kernel, band_out=band, out_w=out_w_p,
                          kh=kh, kw=kw, cin=cin, apply_relu=apply_relu),
        out_shape=jax.ShapeDtypeStruct((n, nb, band * out_w_p, cout),
                                       jnp.float32),
        grid=(n, nb),
        in_specs=[
            pl.BlockSpec((None, None, band_in, wp_p, cin),
                         lambda i, j: (i, j, 0, 0, 0)),
            pl.BlockSpec((1, 1, cin), lambda i, j: (0, 0, 0)),
            pl.BlockSpec((1, 1, cin), lambda i, j: (0, 0, 0)),
            pl.BlockSpec((K, cout), lambda i, j: (0, 0)),
        ],
        out_specs=pl.BlockSpec((None, None, band * out_w_p, cout),
                               lambda i, j: (i, j, 0, 0)),
        compiler_params=pltpu.CompilerParams(
            dimension_semantics=("parallel", "parallel"),
            vmem_limit_bytes=vmem_limit),
    )(xb, scale.reshape(1, 1, cin), shift.reshape(1, 1, cin), w2)
    out = out.reshape(n, out_h_p, out_w_p, cout)
    return out[:, :out_h, :out_w]


def _conv_pallas_general(xp, w2, k, stride, out_sp, cin, cout, budgets):
    """General n-D / strided conv: bf16 im2col (K = T*Cin) + plain MXU matmul.

    xp is already BN+ReLU-normalized, zero-padded and cast to bf16.
    """
    vmem_limit, _, tile_budget = budgets
    n = xp.shape[0]
    T = int(np.prod(k))
    K = T * cin
    m = n * int(np.prod(out_sp))
    cols = []
    for tap in np.ndindex(*k):
        sl = ((slice(None),)
              + tuple(slice(t, t + st * (o - 1) + 1, st)
                      for t, st, o in zip(tap, stride, out_sp))
              + (slice(None),))
        cols.append(xp[sl].reshape(m, cin))
    a = jnp.concatenate(cols, axis=1)                         # (M, K) bf16

    tm = _pick_tile_m(m, K, cout, tile_budget)
    mp = _cdiv(m, tm) * tm
    if mp != m:
        a = jnp.concatenate([a, jnp.zeros((mp - m, K), a.dtype)], axis=0)

    out = pl.pallas_call(
        _patch_matmul_kernel,
        out_shape=jax.ShapeDtypeStruct((mp, cout), jnp.float32),
        grid=(mp // tm,),
        in_specs=[
            pl.BlockSpec((tm, K), lambda i: (i, 0)),
            pl.BlockSpec((K, cout), lambda i: (0, 0)),
        ],
        out_specs=pl.BlockSpec((tm, cout), lambda i: (i, 0)),
        compiler_params=pltpu.CompilerParams(
            dimension_semantics=("parallel",),
            vmem_limit_bytes=vmem_limit),
    )(a, w2)
    return out[:m].reshape((n,) + out_sp + (cout,))


def _conv_forward(x, w, stride, padding, mean, scale, shift, apply_relu,
                  budgets):
    """n-D conv; x channels-last raw (pre-BN); w torch layout (Cout, Cin, *k)."""
    nd = w.ndim - 2
    stride = _tup(stride, nd)
    padding = _tup(padding, nd)
    cout, cin = int(w.shape[0]), int(w.shape[1])
    k = tuple(int(v) for v in w.shape[2:])
    # Weight reformatted once per call to the (T*Cin, Cout) matmul layout, bf16.
    w2 = jnp.moveaxis(w, (0, 1), (-1, -2)).reshape(-1, cout).astype(jnp.bfloat16)

    if nd == 2 and stride == (1, 1):
        xp = _mean_pad(x, tuple((p, p) for p in padding), mean)
        return _conv_pallas_2d_s1(xp, w2, scale, shift, mean, k[0], k[1],
                                  cin, cout, apply_relu, budgets)

    # General (strided / 3-D) path: normalize ONCE, cast to bf16, zero-pad, im2col.
    # TODO(synk): build the patch matrix in VMEM for strided / 3-D convs too
    # (band over D or H) instead of materializing the (M, T*Cin) im2col in HBM.
    xn = x * scale + shift
    if apply_relu:
        xn = jnp.maximum(xn, 0.0)
    xn = xn.astype(jnp.bfloat16)
    xp = jnp.pad(xn, ((0, 0),) + tuple((p, p) for p in padding) + ((0, 0),))
    out_sp = tuple((s - kk) // st + 1
                   for s, kk, st in zip(xp.shape[1:-1], k, stride))
    return _conv_pallas_general(xp, w2, k, stride, out_sp, cin, cout, budgets)


def _deconv_forward(x, w, stride, padding, output_padding, mean, scale, shift,
                    apply_relu, budgets):
    """ConvTranspose via sub-pixel phase decomposition.

    Runs stride**nd stride-1 convs on the un-dilated input (no multiply-by-zero
    work) and interleaves results. w is torch ConvTranspose layout (Cin,Cout,*k).
    """
    # TODO(synk): fuse the stride**nd per-phase pallas_calls into a single call
    # (extra phase grid axis + resident weights) to amortize launches / weight DMA.
    nd = w.ndim - 2
    stride = _tup(stride, nd)
    padding = _tup(padding, nd)
    output_padding = _tup(output_padding, nd)
    cout = int(w.shape[1])
    k = tuple(int(v) for v in w.shape[2:])
    n = x.shape[0]
    l_in = x.shape[1:-1]
    l_out = tuple((l - 1) * s - 2 * p + kk + op
                  for l, s, p, kk, op in zip(l_in, stride, padding, k,
                                             output_padding))
    pad_lo = tuple(kk - 1 - p for kk, p in zip(k, padding))
    # Conv-equivalent kernel: flip spatially, swap channel axes -> (Cout, Cin, *k).
    w_eq = jnp.swapaxes(jnp.flip(w, axis=tuple(range(2, w.ndim))), 0, 1)

    out = jnp.zeros((n,) + l_out + (cout,), jnp.float32)
    for phase in np.ndindex(*stride):
        j0, nj, dj0, mr = [], [], [], []
        ok = True
        for d in range(nd):
            ro = phase[d]
            if ro >= l_out[d]:
                ok = False
                break
            j0_d = (pad_lo[d] - ro) % stride[d]
            nj_d = len(range(j0_d, k[d], stride[d]))
            if nj_d == 0:
                ok = False
                break
            dj0_d = (ro + j0_d - pad_lo[d]) // stride[d]
            mr_d = (l_out[d] - ro + stride[d] - 1) // stride[d]
            j0.append(j0_d); nj.append(nj_d); dj0.append(dj0_d); mr.append(mr_d)
        if not ok:
            continue
        # Phase sub-kernel and aligned / mean-padded input slab.
        w_sub = w_eq[(slice(None), slice(None))
                     + tuple(slice(j0[d], None, stride[d]) for d in range(nd))]
        pads, slices = [], []
        for d in range(nd):
            need = mr[d] + nj[d] - 1
            lo = max(0, -dj0[d])
            hi = max(0, dj0[d] + need - l_in[d])
            pads.append((lo, hi))
            slices.append(slice(dj0[d] + lo, dj0[d] + lo + need))
        xs = _mean_pad(x, tuple(pads), mean)
        xs = xs[(slice(None),) + tuple(slices) + (slice(None),)]
        y = _conv_forward(xs, w_sub, (1,) * nd, (0,) * nd, mean, scale, shift,
                          apply_relu, budgets)
        out = out.at[(slice(None),)
                     + tuple(slice(phase[d], None, stride[d]) for d in range(nd))
                     + (slice(None),)].set(y)
    return out


# ----------------------------------------------------------------------------
# BasicConv (PyTorch contract: NCHW / NCDHW in and out)
# ----------------------------------------------------------------------------
def basic_conv(x_nc, weight, *, deconv=False, is_3d=False, bn=True, relu=True,
               stride=1, padding=0, output_padding=0):
    """BasicConv forward: [train-mode BN] -> [ReLU] -> conv / conv-transpose.

    BN uses batch statistics (biased variance, eps=1e-5) with the default
    gamma=1 / beta=0 affine, matching a freshly constructed PyTorch module in
    training mode. BN + ReLU are applied exactly once per input element.
    """
    nd = 3 if is_3d else 2
    perm_in = (0,) + tuple(range(2, 2 + nd)) + (1,)
    x = jnp.transpose(x_nc, perm_in).astype(jnp.float32)      # channels-last
    cin = x.shape[-1]
    if bn:
        red = tuple(range(0, 1 + nd))                          # (N, *spatial)
        mean = jnp.mean(x, axis=red)
        ex2 = jnp.mean(jnp.square(x), axis=red)                # one-pass stats
        var = jnp.maximum(ex2 - jnp.square(mean), 0.0)
        inv = lax.rsqrt(var + _BN_EPS)
        scale, shift = inv, -mean * inv
    else:
        mean = jnp.zeros((cin,), jnp.float32)
        scale = jnp.ones((cin,), jnp.float32)
        shift = jnp.zeros((cin,), jnp.float32)

    budgets = _vmem_budgets()
    if deconv:
        y = _deconv_forward(x, weight, stride, padding, output_padding,
                            mean, scale, shift, relu, budgets)
    else:
        y = _conv_forward(x, weight, stride, padding, mean, scale, shift, relu,
                          budgets)
    perm_out = (0, 1 + nd) + tuple(range(1, 1 + nd))
    return jnp.transpose(y, perm_out)


# ----------------------------------------------------------------------------
# Pure-XLA reference (PyTorch semantics) for in-script validation
# ----------------------------------------------------------------------------
def ref_basic_conv(x_nc, weight, *, deconv=False, is_3d=False, bn=True,
                   relu=True, stride=1, padding=0, output_padding=0):
    nd = 3 if is_3d else 2
    stride = _tup(stride, nd)
    padding = _tup(padding, nd)
    output_padding = _tup(output_padding, nd)
    xf = x_nc.astype(jnp.float32)
    if bn:
        axes = (0,) + tuple(range(2, 2 + nd))
        mean = jnp.mean(xf, axis=axes, keepdims=True)
        var = jnp.mean(jnp.square(xf - mean), axis=axes, keepdims=True)
        xf = (xf - mean) * lax.rsqrt(var + _BN_EPS)
    if relu:
        xf = jnp.maximum(xf, 0.0)
    dn = ("NCDHW", "OIDHW", "NCDHW") if is_3d else ("NCHW", "OIHW", "NCHW")
    if not deconv:
        return lax.conv_general_dilated(
            xf, weight, window_strides=stride,
            padding=[(p, p) for p in padding], dimension_numbers=dn)
    k = weight.shape[2:]
    w_eq = jnp.swapaxes(jnp.flip(weight, axis=tuple(range(2, weight.ndim))), 0, 1)
    return lax.conv_general_dilated(
        xf, w_eq, window_strides=(1,) * nd,
        padding=[(kk - 1 - p, kk - 1 - p + op)
                 for kk, p, op in zip(k, padding, output_padding)],
        lhs_dilation=stride, dimension_numbers=dn)


# ----------------------------------------------------------------------------
if __name__ == "__main__":
    key = jax.random.PRNGKey(0)
    ks = jax.random.split(key, 8)

    def check(name, out, ref):
        assert out.shape == ref.shape, (name, out.shape, ref.shape)
        assert bool(jnp.all(jnp.isfinite(out))), name
        err = float(jnp.max(jnp.abs(out - ref)) / (jnp.max(jnp.abs(ref)) + 1e-6))
        assert err < 5e-2, (name, err)   # bf16 MXU operands, f32 accumulation

    # 2-D BasicConv, 3x3 stride 1, pad 1  (in-VMEM tap-gather path)
    x2 = jax.random.normal(ks[0], (2, 16, 16, 16), jnp.float32)          # NCHW
    w_a = 0.1 * jax.random.normal(ks[1], (32, 16, 3, 3), jnp.float32)
    out_a = basic_conv(x2, w_a, stride=1, padding=1)
    check("conv2d_s1", out_a, ref_basic_conv(x2, w_a, stride=1, padding=1))

    # 2-D BasicConv, 3x3 stride 2, pad 1  (bf16 im2col + matmul path)
    w_b = 0.1 * jax.random.normal(ks[2], (32, 16, 3, 3), jnp.float32)
    out_b = basic_conv(x2, w_b, stride=2, padding=1)
    check("conv2d_s2", out_b, ref_basic_conv(x2, w_b, stride=2, padding=1))

    # 3-D BasicConv, 3x3x3 stride 1, pad 1
    x3 = jax.random.normal(ks[3], (2, 8, 8, 8, 8), jnp.float32)          # NCDHW
    w_c = 0.1 * jax.random.normal(ks[4], (16, 8, 3, 3, 3), jnp.float32)
    out_c = basic_conv(x3, w_c, is_3d=True, stride=1, padding=1)
    check("conv3d_s1", out_c,
          ref_basic_conv(x3, w_c, is_3d=True, stride=1, padding=1))

    # 2-D BasicConv, transposed, 3x3 stride 2 (phase-decomposed deconv)
    xd = jax.random.normal(ks[5], (2, 16, 8, 8), jnp.float32)            # NCHW
    w_d = 0.1 * jax.random.normal(ks[6], (16, 16, 3, 3), jnp.float32)    # (Cin,Cout,kh,kw)
    out_d = basic_conv(xd, w_d, deconv=True, stride=2, padding=1,
                       output_padding=1)
    check("deconv2d_s2", out_d,
          ref_basic_conv(xd, w_d, deconv=True, stride=2, padding=1,
                         output_padding=1))

    jax.block_until_ready((out_a, out_b, out_c, out_d))
    print("KERNEL_OK")
</pallas_src>

<mosaic_0001>
module attributes {stable_mosaic.version = 11 : i64} {
  func.func @_conv2d_s1_kernel(%arg0: i32, %arg1: i32, %arg2: memref<1x1x18x18x16xf32, #tpu.memory_space<vmem>>, %arg3: memref<1x1x16xf32, #tpu.memory_space<vmem>>, %arg4: memref<1x1x16xf32, #tpu.memory_space<vmem>>, %arg5: memref<144x32xbf16, #tpu.memory_space<vmem>>, %arg6: memref<1x1x256x32xf32, #tpu.memory_space<vmem>>) attributes {dimension_semantics = [#tpu.dimension_semantics<parallel>, #tpu.dimension_semantics<parallel>], iteration_bounds = array<i64: 2, 1>, scalar_prefetch = 0 : i64, scratch_operands = 0 : i64, tpu.core_type = #tpu.core_type<tc>, window_params = [{transform_indices = @transform_0, window_bounds = array<i64: 1, 1, 18, 18, 16>}, {pipeline_mode = #tpu.pipeline_mode<synchronous>, transform_indices = @transform_1, window_bounds = array<i64: 1, 1, 16>}, {pipeline_mode = #tpu.pipeline_mode<synchronous>, transform_indices = @transform_2, window_bounds = array<i64: 1, 1, 16>}, {pipeline_mode = #tpu.pipeline_mode<synchronous>, transform_indices = @transform_3, window_bounds = array<i64: 144, 32>}, {transform_indices = @transform_4, window_bounds = array<i64: 1, 1, 256, 32>}]} {
    %c0 = arith.constant 0 : index
    %c0_0 = arith.constant 0 : index
    %c0_1 = arith.constant 0 : index
    %c0_2 = arith.constant 0 : index
    %c0_3 = arith.constant 0 : index
    %0 = vector.load %arg2[%c0, %c0_0, %c0_1, %c0_2, %c0_3] : memref<1x1x18x18x16xf32, #tpu.memory_space<vmem>>, vector<1x1x18x18x16xf32>
    %1 = vector.shape_cast %0 : vector<1x1x18x18x16xf32> to vector<18x18x16xf32>
    %c0_4 = arith.constant 0 : index
    %c0_5 = arith.constant 0 : index
    %c0_6 = arith.constant 0 : index
    %2 = vector.load %arg3[%c0_4, %c0_5, %c0_6] : memref<1x1x16xf32, #tpu.memory_space<vmem>>, vector<1x1x16xf32>
    %3 = vector.broadcast %2 : vector<1x1x16xf32> to vector<18x18x16xf32>
    %4 = arith.mulf %1, %3 : vector<18x18x16xf32>
    %c0_7 = arith.constant 0 : index
    %c0_8 = arith.constant 0 : index
    %c0_9 = arith.constant 0 : index
    %5 = vector.load %arg4[%c0_7, %c0_8, %c0_9] : memref<1x1x16xf32, #tpu.memory_space<vmem>>, vector<1x1x16xf32>
    %6 = vector.broadcast %5 : vector<1x1x16xf32> to vector<18x18x16xf32>
    %7 = arith.addf %4, %6 : vector<18x18x16xf32>
    %cst = arith.constant 0.000000e+00 : f32
    %8 = vector.broadcast %cst : f32 to vector<18x18x16xf32>
    %9 = arith.maximumf %7, %8 : vector<18x18x16xf32>
    %10 = arith.truncf %9 : vector<18x18x16xf32> to vector<18x18x16xbf16>
    %cst_10 = arith.constant 0.000000e+00 : f32
    %11 = vector.broadcast %cst_10 : f32 to vector<256x32xf32>
    %12 = vector.extract_strided_slice %10 {offsets = [0, 0, 0], sizes = [16, 16, 16], strides = [1, 1, 1]} : vector<18x18x16xbf16> to vector<16x16x16xbf16>
    %13 = vector.shape_cast %12 : vector<16x16x16xbf16> to vector<256x16xbf16>
    %c0_11 = arith.constant 0 : index
    %c0_12 = arith.constant 0 : index
    %14 = vector.load %arg5[%c0_11, %c0_12] : memref<144x32xbf16, #tpu.memory_space<vmem>>, vector<16x32xbf16>
    %cst_13 = arith.constant dense<0.000000e+00> : vector<256x32xf32>
    %15 = tpu.matmul %13, %14, %cst_13 {dimension_numbers = #tpu.dot_dimension_numbers<[1], [0], [0], [1], [0, 0, 1, 1], [], []>} : vector<256x16xbf16>, vector<16x32xbf16>, vector<256x32xf32> -> vector<256x32xf32>
    %16 = arith.addf %11, %15 : vector<256x32xf32>
    %17 = vector.extract_strided_slice %10 {offsets = [0, 1, 0], sizes = [16, 16, 16], strides = [1, 1, 1]} : vector<18x18x16xbf16> to vector<16x16x16xbf16>
    %18 = vector.shape_cast %17 : vector<16x16x16xbf16> to vector<256x16xbf16>
    %c16 = arith.constant 16 : index
    %c0_14 = arith.constant 0 : index
    %19 = vector.load %arg5[%c16, %c0_14] : memref<144x32xbf16, #tpu.memory_space<vmem>>, vector<16x32xbf16>
    %cst_15 = arith.constant dense<0.000000e+00> : vector<256x32xf32>
    %20 = tpu.matmul %18, %19, %cst_15 {dimension_numbers = #tpu.dot_dimension_numbers<[1], [0], [0], [1], [0, 0, 1, 1], [], []>} : vector<256x16xbf16>, vector<16x32xbf16>, vector<256x32xf32> -> vector<256x32xf32>
    %21 = arith.addf %16, %20 : vector<256x32xf32>
    %22 = vector.extract_strided_slice %10 {offsets = [0, 2, 0], sizes = [16, 16, 16], strides = [1, 1, 1]} : vector<18x18x16xbf16> to vector<16x16x16xbf16>
    %23 = vector.shape_cast %22 : vector<16x16x16xbf16> to vector<256x16xbf16>
    %c32 = arith.constant 32 : index
    %c0_16 = arith.constant 0 : index
    %24 = vector.load %arg5[%c32, %c0_16] : memref<144x32xbf16, #tpu.memory_space<vmem>>, vector<16x32xbf16>
    %cst_17 = arith.constant dense<0.000000e+00> : vector<256x32xf32>
    %25 = tpu.matmul %23, %24, %cst_17 {dimension_numbers = #tpu.dot_dimension_numbers<[1], [0], [0], [1], [0, 0, 1, 1], [], []>} : vector<256x16xbf16>, vector<16x32xbf16>, vector<256x32xf32> -> vector<256x32xf32>
    %26 = arith.addf %21, %25 : vector<256x32xf32>
    %27 = vector.extract_strided_slice %10 {offsets = [1, 0, 0], sizes = [16, 16, 16], strides = [1, 1, 1]} : vector<18x18x16xbf16> to vector<16x16x16xbf16>
    %28 = vector.shape_cast %27 : vector<16x16x16xbf16> to vector<256x16xbf16>
    %c48 = arith.constant 48 : index
    %c0_18 = arith.constant 0 : index
    %29 = vector.load %arg5[%c48, %c0_18] : memref<144x32xbf16, #tpu.memory_space<vmem>>, vector<16x32xbf16>
    %cst_19 = arith.constant dense<0.000000e+00> : vector<256x32xf32>
    %30 = tpu.matmul %28, %29, %cst_19 {dimension_numbers = #tpu.dot_dimension_numbers<[1], [0], [0], [1], [0, 0, 1, 1], [], []>} : vector<256x16xbf16>, vector<16x32xbf16>, vector<256x32xf32> -> vector<256x32xf32>
    %31 = arith.addf %26, %30 : vector<256x32xf32>
    %32 = vector.extract_strided_slice %10 {offsets = [1, 1, 0], sizes = [16, 16, 16], strides = [1, 1, 1]} : vector<18x18x16xbf16> to vector<16x16x16xbf16>
    %33 = vector.shape_cast %32 : vector<16x16x16xbf16> to vector<256x16xbf16>
    %c64 = arith.constant 64 : index
    %c0_20 = arith.constant 0 : index
    %34 = vector.load %arg5[%c64, %c0_20] : memref<144x32xbf16, #tpu.memory_space<vmem>>, vector<16x32xbf16>
    %cst_21 = arith.constant dense<0.000000e+00> : vector<256x32xf32>
    %35 = tpu.matmul %33, %34, %cst_21 {dimension_numbers = #tpu.dot_dimension_numbers<[1], [0], [0], [1], [0, 0, 1, 1], [], []>} : vector<256x16xbf16>, vector<16x32xbf16>, vector<256x32xf32> -> vector<256x32xf32>
    %36 = arith.addf %31, %35 : vector<256x32xf32>
    %37 = vector.extract_strided_slice %10 {offsets = [1, 2, 0], sizes = [16, 16, 16], strides = [1, 1, 1]} : vector<18x18x16xbf16> to vector<16x16x16xbf16>
    %38 = vector.shape_cast %37 : vector<16x16x16xbf16> to vector<256x16xbf16>
    %c80 = arith.constant 80 : index
    %c0_22 = arith.constant 0 : index
    %39 = vector.load %arg5[%c80, %c0_22] : memref<144x32xbf16, #tpu.memory_space<vmem>>, vector<16x32xbf16>
    %cst_23 = arith.constant dense<0.000000e+00> : vector<256x32xf32>
    %40 = tpu.matmul %38, %39, %cst_23 {dimension_numbers = #tpu.dot_dimension_numbers<[1], [0], [0], [1], [0, 0, 1, 1], [], []>} : vector<256x16xbf16>, vector<16x32xbf16>, vector<256x32xf32> -> vector<256x32xf32>
    %41 = arith.addf %36, %40 : vector<256x32xf32>
    %42 = vector.extract_strided_slice %10 {offsets = [2, 0, 0], sizes = [16, 16, 16], strides = [1, 1, 1]} : vector<18x18x16xbf16> to vector<16x16x16xbf16>
    %43 = vector.shape_cast %42 : vector<16x16x16xbf16> to vector<256x16xbf16>
    %c96 = arith.constant 96 : index
    %c0_24 = arith.constant 0 : index
    %44 = vector.load %arg5[%c96, %c0_24] : memref<144x32xbf16, #tpu.memory_space<vmem>>, vector<16x32xbf16>
    %cst_25 = arith.constant dense<0.000000e+00> : vector<256x32xf32>
    %45 = tpu.matmul %43, %44, %cst_25 {dimension_numbers = #tpu.dot_dimension_numbers<[1], [0], [0], [1], [0, 0, 1, 1], [], []>} : vector<256x16xbf16>, vector<16x32xbf16>, vector<256x32xf32> -> vector<256x32xf32>
    %46 = arith.addf %41, %45 : vector<256x32xf32>
    %47 = vector.extract_strided_slice %10 {offsets = [2, 1, 0], sizes = [16, 16, 16], strides = [1, 1, 1]} : vector<18x18x16xbf16> to vector<16x16x16xbf16>
    %48 = vector.shape_cast %47 : vector<16x16x16xbf16> to vector<256x16xbf16>
    %c112 = arith.constant 112 : index
    %c0_26 = arith.constant 0 : index
    %49 = vector.load %arg5[%c112, %c0_26] : memref<144x32xbf16, #tpu.memory_space<vmem>>, vector<16x32xbf16>
    %cst_27 = arith.constant dense<0.000000e+00> : vector<256x32xf32>
    %50 = tpu.matmul %48, %49, %cst_27 {dimension_numbers = #tpu.dot_dimension_numbers<[1], [0], [0], [1], [0, 0, 1, 1], [], []>} : vector<256x16xbf16>, vector<16x32xbf16>, vector<256x32xf32> -> vector<256x32xf32>
    %51 = arith.addf %46, %50 : vector<256x32xf32>
    %52 = vector.extract_strided_slice %10 {offsets = [2, 2, 0], sizes = [16, 16, 16], strides = [1, 1, 1]} : vector<18x18x16xbf16> to vector<16x16x16xbf16>
    %53 = vector.shape_cast %52 : vector<16x16x16xbf16> to vector<256x16xbf16>
    %c128 = arith.constant 128 : index
    %c0_28 = arith.constant 0 : index
    %54 = vector.load %arg5[%c128, %c0_28] : memref<144x32xbf16, #tpu.memory_space<vmem>>, vector<16x32xbf16>
    %cst_29 = arith.constant dense<0.000000e+00> : vector<256x32xf32>
    %55 = tpu.matmul %53, %54, %cst_29 {dimension_numbers = #tpu.dot_dimension_numbers<[1], [0], [0], [1], [0, 0, 1, 1], [], []>} : vector<256x16xbf16>, vector<16x32xbf16>, vector<256x32xf32> -> vector<256x32xf32>
    %56 = arith.addf %51, %55 : vector<256x32xf32>
    %c0_30 = arith.constant 0 : index
    %c0_31 = arith.constant 0 : index
    %c0_32 = arith.constant 0 : index
    %c0_33 = arith.constant 0 : index
    %57 = vector.load %arg6[%c0_30, %c0_31, %c0_32, %c0_33] : memref<1x1x256x32xf32, #tpu.memory_space<vmem>>, vector<1x1x256x32xf32>
    %58 = vector.shape_cast %57 : vector<1x1x256x32xf32> to vector<256x32xf32>
    %59 = vector.shape_cast %56 : vector<256x32xf32> to vector<1x1x256x32xf32>
    tpu.vector_store %arg6[%c0_30, %c0_31, %c0_32, %c0_33], %59 {strides = array<i32>} : memref<1x1x256x32xf32, #tpu.memory_space<vmem>>, vector<1x1x256x32xf32>,
    return
  }
  func.func @transform_0(%arg0: i32, %arg1: i32) -> (i32, i32, i32, i32, i32) {
    %c0_i32 = arith.constant 0 : i32
    %c0_i32_0 = arith.constant 0 : i32
    %c0_i32_1 = arith.constant 0 : i32
    %c0_i32_2 = arith.constant 0 : i32
    return %arg0, %arg1, %c0_i32, %c0_i32_0, %c0_i32_1 : i32, i32, i32, i32, i32
  }
  func.func @transform_1(%arg0: i32, %arg1: i32) -> (i32, i32, i32) {
    %c0_i32 = arith.constant 0 : i32
    %c0_i32_0 = arith.constant 0 : i32
    %c0_i32_1 = arith.constant 0 : i32
    %c0_i32_2 = arith.constant 0 : i32
    return %c0_i32, %c0_i32_0, %c0_i32_1 : i32, i32, i32
  }
  func.func @transform_2(%arg0: i32, %arg1: i32) -> (i32, i32, i32) {
    %c0_i32 = arith.constant 0 : i32
    %c0_i32_0 = arith.constant 0 : i32
    %c0_i32_1 = arith.constant 0 : i32
    %c0_i32_2 = arith.constant 0 : i32
    return %c0_i32, %c0_i32_0, %c0_i32_1 : i32, i32, i32
  }
  func.func @transform_3(%arg0: i32, %arg1: i32) -> (i32, i32) {
    %c0_i32 = arith.constant 0 : i32
    %c0_i32_0 = arith.constant 0 : i32
    %c0_i32_1 = arith.constant 0 : i32
    return %c0_i32, %c0_i32_0 : i32, i32
  }
  func.func @transform_4(%arg0: i32, %arg1: i32) -> (i32, i32, i32, i32) {
    %c0_i32 = arith.constant 0 : i32
    %c0_i32_0 = arith.constant 0 : i32
    %c0_i32_1 = arith.constant 0 : i32
    return %arg0, %arg1, %c0_i32, %c0_i32_0 : i32, i32, i32, i32
  }
}

</mosaic_0001>

<bundles_post_ra>
// kernel: tpu_custom_call.1
= control target key start
LH: loop header
LB: loop body
LE: loop exit
PB: predicated region body
PF: predicated region fallthrough
CT: control target
= control target key end

     0   :  { %s3536_s15 = smov 0   ;;  %s3538_s16 = smov 0   ;;  %s4887_s0 = inlined_call_operand.vmem [shape: f32[2,1,18,18,16], index: 0, kind: input, shape index: {}]   ;;  %s4888_s1 = inlined_call_operand.vmem [shape: f32[1,1,16], index: 1, kind: input, shape index: {}]   ;;  %s4889_s2 = inlined_call_operand.vmem [shape: f32[1,1,16], index: 2, kind: input, shape index: {}]   ;;  %s4890_s3 = inlined_call_operand.vmem [shape: bf16[144,32], index: 3, kind: input, shape index: {}]   ;;  %s4891_s4 = inlined_call_operand.vmem [shape: f32[2,1,256,32], index: 4, kind: output, shape index: {}]  }
   0x1   :  { %s3540_s17 = smov 0  }
   0x2 LB: > { %s26_s18 = sadd.s32 1, %s3505_s16  ;;  %p2828_p0 = scmp.ge.s32.totalorder %s3509_s17, 1  ;;  %s3509_s17 = sphi %s3540_s17, %s14_s17   ;;  %s3505_s16 = sphi %s3538_s16, %s5002_s16   ;;  %s3501_s15 = sphi %s3536_s15, %s5001_s15  }
   0x3   : > { %p28_p1 = scmp.ge.s32.totalorder %s26_s18, 2  ;;  %p182_p2 = scmp.lt.s32.totalorder %s3509_s17, 3 }
   0x5   : > { %s5004_s18 = smov (%p28_p1, %s26_s18), 0  ;;  %p183_p3 = pnand %p2828_p0, %p182_p2 }
   0x7   : > { %186 = sbr.rel (%p183_p3) target bundleno = 558 (0x22e), region = 36 }
   0xc   : > { %v3476_v0 = vld [vmem:[%s4890_s3 + $0x8] sm:$0xff]   ;;  %p216_p4 = scmp.lt.s32.totalorder %s3501_s15, 1  ;;  %v3562_v1 = vld [vmem:[%s4890_s3] sm:$0xff]   ;;  %v3568_v2 = vld [vmem:[%s4890_s3 + $0x10] sm:$0xff]   ;;  %vm503_vm0 = vsmask.f32 7424 }
   0xd   : > { %3449 = vmatprep.subr.bf16.mxu1 %v3476_v0  ;;  %3143 = vmatprep.subr.bf16.mxu0 %v3476_v0  ;;  %v3573_v3 = vld [vmem:[%s4888_s1] ss:$0 sm:$0xff]  ;;  %vm704_vm1 = vcmask 130048   ;;  %vm1145_vm2 = vcmask 1046528   ;;  %vm2699_vm3 = vcmask 261120  }
   0xe   : > { %s5006_s15 = smov (!%p216_p4, %s3501_s15), 1  ;;  %3450 = vmatpush3.bf16.msra.mxu1 %v3476_v0  ;;  %3144 = vmatpush3.bf16.msra.mxu0 %v3476_v0  ;;  %v3584_v4 = vld [vmem:[%s4889_s2] ss:$0 sm:$0xff] }
   0xf   : > { %s3451_s23 = smul.u32 432, %s5006_s15  ;;  %3177 = vmatprep.subr.bf16.mxu1 %v3562_v1  ;;  %3211 = vmatprep.subr.bf16.mxu0 %v3568_v2  ;;  %s2989_s27 = sshll.u32 %s5006_s15, 8 }
  0x11   : > { %s3579_s30 = scalar_lea.vmem %s4887_s0, %s3451_s23 }
  0x12   : > { %v235_v5 = vld [vmem:[%s3579_s30] sm:$0xff]  ;;  %v236_v6 = vld [vmem:[%s3579_s30 + $0x8] sm:$0xff]  ;;  %v237_v7 = vld [vmem:[%s3579_s30 + $0x10] sm:$0x3] }
  0x13   : > { %v296_v8 = vmul.f32 %v3573_v3, %v235_v5  ;;  %v297_v9 = vmul.f32 %v3573_v3, %v236_v6  ;;  %v298_v10 = vmul.f32 %v3573_v3, %v237_v7  ;;  %v259_v11 = vld [vmem:[%s3579_s30 + $0xc0] sm:$0xff]  ;;  %v260_v12 = vld [vmem:[%s3579_s30 + $0xc8] sm:$0xff]  ;;  %v261_v13 = vld [vmem:[%s3579_s30 + $0xd0] sm:$0x3] }
  0x14   : > { %v320_v14 = vmul.f32 %v3573_v3, %v259_v11  ;;  %v321_v15 = vmul.f32 %v3573_v3, %v260_v12  ;;  %v322_v16 = vmul.f32 %v3573_v3, %v261_v13  ;;  %v238_v17 = vld [vmem:[%s3579_s30 + $0x18] sm:$0xff]  ;;  %v239_v18 = vld [vmem:[%s3579_s30 + $0x20] sm:$0xff]  ;;  %v240_v19 = vld [vmem:[%s3579_s30 + $0x28] sm:$0x3] }
  0x15   : > { %v357_v20 = vadd.f32 %v3584_v4, %v296_v8  ;;  %v358_v21 = vadd.f32 %v3584_v4, %v297_v9  ;;  %v359_v22 = vadd.f32 %v3584_v4, %v298_v10  ;;  %v299_v23 = vmul.f32 %v3573_v3, %v238_v17  ;;  %v262_v32 = vld [vmem:[%s3579_s30 + $0xd8] sm:$0xff]  ;;  %v263_v44 = vld [vmem:[%s3579_s30 + $0xe0] sm:$0xff]  ;;  %v264_v50 = vld [vmem:[%s3579_s30 + $0xe8] sm:$0x3] }
  0x16   : > { %v381_v24 = vadd.f32 %v3584_v4, %v320_v14  ;;  %v382_v25 = vadd.f32 %v3584_v4, %v321_v15  ;;  %v383_v26 = vadd.f32 %v3584_v4, %v322_v16  ;;  %v300_v27 = vmul.f32 %v3573_v3, %v239_v18  ;;  %v241_v7 = vld [vmem:[%s3579_s30 + $0x30] sm:$0xff]  ;;  %v242_v11 = vld [vmem:[%s3579_s30 + $0x38] sm:$0xff]  ;;  %v243_v12 = vld [vmem:[%s3579_s30 + $0x40] sm:$0x3] }
  0x17   : > { %v411_v28 = vmax.f32 %v357_v20, 0.0  ;;  %v412_v29 = vmax.f32 %v358_v21, 0.0  ;;  %v413_v30 = vmax.f32 %v359_v22, 0.0  ;;  %v301_v31 = vmul.f32 %v3573_v3, %v240_v19  ;;  %v265_v17 = vld [vmem:[%s3579_s30 + $0xf0] sm:$0xff]  ;;  %v266_v18 = vld [vmem:[%s3579_s30 + $0xf8] sm:$0xff] }
  0x18   : > { %v435_v33 = vmax.f32 %v381_v24, 0.0  ;;  %v436_v34 = vmax.f32 %v382_v25, 0.0  ;;  %v437_v35 = vmax.f32 %v383_v26, 0.0  ;;  %v360_v36 = vadd.f32 %v3584_v4, %v299_v23 }
  0x19   : > { %v3613_v37 = vpack.c.bf16 %v412_v29, %v411_v28  ;;  %v3615_v38 = vpack.c.bf16 %v413_v30, %v413_v30  ;;  %v361_v39 = vadd.f32 %v3584_v4, %v300_v27  ;;  %v362_v40 = vadd.f32 %v3584_v4, %v301_v31  ;;  %v267_v27 = vld [vmem:[%s3579_s30 + $0x100] sm:$0x3] }
  0x1a   : > { %v3619_v41 = vpack.c.bf16 %v436_v34, %v435_v33  ;;  %v3621_v42 = vpack.c.bf16 %v437_v35, %v437_v35  ;;  %v414_v43 = vmax.f32 %v360_v36, 0.0  ;;  %v323_v45 = vmul.f32 %v3573_v3, %v262_v32  ;;  %v3663_v28 = vld [vmem:[%s4890_s3 + $0x20] sm:$0xff]   ;;  %v244_v33 = vld [vmem:[%s3579_s30 + $0x48] sm:$0xff] }
  0x1b   : > { %v505_v46 = vshrl.u32 %v3613_v37, 16  ;;  %v507_v47 = vshll.u32 %v3613_v37, 16  ;;  %v512_v48 = vshll.u32 %v3615_v38, 16  ;;  %v415_v49 = vmax.f32 %v361_v39, 0.0 }
  0x1c   : > { %v601_v51 = vshrl.u32 %v3619_v41, 16  ;;  %v603_v52 = vshll.u32 %v3619_v41, 16  ;;  %v608_v53 = vshll.u32 %v3621_v42, 16  ;;  %v416_v54 = vmax.f32 %v362_v40, 0.0 }
  0x1d   : > { %v509_v55 = vrot.slane %v507_v47, 1  ;;  %v514_v56 = vrot.slane %v512_v48, 1  ;;  %v3632_v57 = vpack.c.bf16 %v415_v49, %v414_v43  ;;  %v324_v58 = vmul.f32 %v3573_v3, %v263_v44 }
  0x1e   : > { %v605_v59 = vrot.slane %v603_v52, 1  ;;  %v610_v60 = vrot.slane %v608_v53, 1  ;;  %v3635_v61 = vpack.c.bf16 %v416_v54, %v416_v54  ;;  %v325_v62 = vmul.f32 %v3573_v3, %v264_v50  ;;  %v245_v50 = vld [vmem:[%s3579_s30 + $0x50] sm:$0xff]  ;;  %v246_v54 = vld [vmem:[%s3579_s30 + $0x58] sm:$0x3] }
  0x1f   : > { %v510_v63 = vor.u32 %v509_v55, %v505_v46  ;;  %v517_v0 = vshrl.u32 %v3632_v57, 16  ;;  %v519_v5 = vshll.u32 %v3632_v57, 16  ;;  %v384_v6 = vadd.f32 %v3584_v4, %v323_v45 }
  0x20   : > { %v606_v8 = vor.u32 %v605_v59, %v601_v51  ;;  %v524_v9 = vshll.u32 %v3635_v61, 16  ;;  %v385_v10 = vadd.f32 %v3584_v4, %v324_v58  ;;  %v386_v15 = vadd.f32 %v3584_v4, %v325_v62 }
  0x21   : > { %v515_v13 = vsel %vm503_vm0, %v510_v63, %v514_v56  ;;  %v521_v14 = vrot.slane %v519_v5, 1  ;;  %v438_v16 = vmax.f32 %v384_v6, 0.0  ;;  %v302_v22 = vmul.f32 %v3573_v3, %v241_v7 }
  0x22   : > { %3145 = vmatprep.mubr.msk.bf16.mxu0 %vm704_vm1, %v515_v13  ;;  %v3652_v19 = vsel %vm503_vm0, %v606_v8, %v610_v60  ;;  %v526_v20 = vrot.slane %v524_v9, 1  ;;  %v439_v21 = vmax.f32 %v385_v10, 0.0  ;;  %v440_v24 = vmax.f32 %v386_v15, 0.0  ;;  %v3704_v9 = vld [vmem:[%s4890_s3 + $0x18] sm:$0xff]  }
  0x23   : > { %3161 = vmatprep.mubr.msk.bf16.mxu1 %vm704_vm1, %v3652_v19  ;;  %v522_v23 = vor.u32 %v521_v14, %v517_v0  ;;  %v303_v25 = vmul.f32 %v3573_v3, %v242_v11  ;;  %v304_v26 = vmul.f32 %v3573_v3, %v243_v12  ;;  %v363_v30 = vadd.f32 %v3584_v4, %v302_v22  ;;  %v268_v14 = vld [vmem:[%s3579_s30 + $0x108] sm:$0xff] }
  0x24   : > { %v3665_v29 = vpack.c.bf16 %v439_v21, %v438_v16  ;;  %v326_v31 = vmul.f32 %v3573_v3, %v265_v17  ;;  %v327_v32 = vmul.f32 %v3573_v3, %v266_v18  ;;  %v3674_v35 = vpack.c.bf16 %v440_v24, %v440_v24  ;;  %v270_v21 = vld [vmem:[%s3579_s30 + $0x118] sm:$0x3] }
  0x25   : > { %v3672_v34 = vsel %vm503_vm0, %v522_v23, %v526_v20  ;;  %v364_v36 = vadd.f32 %v3584_v4, %v303_v25  ;;  %v365_v39 = vadd.f32 %v3584_v4, %v304_v26  ;;  %v417_v44 = vmax.f32 %v363_v30, 0.0  ;;  %v269_v20 = vld [vmem:[%s3579_s30 + $0x110] sm:$0xff] }
  0x26   : > { %3146 = vmatmul.mubr.msk.bf16.vlgmr.msra.gmra.mxu0 %vm704_vm1, %v3672_v34  ;;  %v613_v40 = vshrl.u32 %v3665_v29, 16  ;;  %v615_v43 = vshll.u32 %v3665_v29, 16  ;;  %v328_v45 = vmul.f32 %v3573_v3, %v267_v27  ;;  %v620_v46 = vshll.u32 %v3674_v35, 16 }
  0x27   : > { %3212 = vmatpush3.bf16.msra.mxu0 %v3568_v2  ;;  %v418_v47 = vmax.f32 %v364_v36, 0.0  ;;  %v419_v48 = vmax.f32 %v365_v39, 0.0  ;;  %v387_v49 = vadd.f32 %v3584_v4, %v326_v31  ;;  %v388_v52 = vadd.f32 %v3584_v4, %v327_v32  ;;  %v247_v32 = vld [vmem:[%s3579_s30 + $0x60] sm:$0xff] }
  0x28   : > { %v617_v51 = vrot.slane %v615_v43, 1  ;;  %v389_v53 = vadd.f32 %v3584_v4, %v328_v45  ;;  %v305_v55 = vmul.f32 %v3573_v3, %v244_v33  ;;  %3279 = vmatprep.subr.bf16.mxu0 %v3663_v28  ;;  %v622_v56 = vrot.slane %v620_v46, 1  ;;  %v248_v46 = vld [vmem:[%s3579_s30 + $0x68] sm:$0xff] }
  0x29   : > { %v3692_v58 = vpack.c.bf16 %v418_v47, %v417_v44  ;;  %v3694_v2 = vpack.c.bf16 %v419_v48, %v419_v48  ;;  %v441_v59 = vmax.f32 %v387_v49, 0.0  ;;  %v442_v62 = vmax.f32 %v388_v52, 0.0 }
  0x2a   : > { %v618_v60 = vor.u32 %v617_v51, %v613_v40  ;;  %v443_v63 = vmax.f32 %v389_v53, 0.0  ;;  %v306_v0 = vmul.f32 %v3573_v3, %v245_v50  ;;  %v307_v8 = vmul.f32 %v3573_v3, %v246_v54  ;;  %v249_v50 = vld [vmem:[%s3579_s30 + $0x70] sm:$0x3] }
  0x2b   : > { %v529_v5 = vshrl.u32 %v3692_v58, 16  ;;  %v531_v6 = vshll.u32 %v3692_v58, 16  ;;  %v536_v7 = vshll.u32 %v3694_v2, 16  ;;  %v3709_v11 = vpack.c.bf16 %v442_v62, %v441_v59 }
  0x2c   : > { %v3707_v10 = vsel %vm503_vm0, %v618_v60, %v622_v56  ;;  %v3711_v12 = vpack.c.bf16 %v443_v63, %v443_v63  ;;  %v366_v13 = vadd.f32 %v3584_v4, %v305_v55  ;;  %v367_v17 = vadd.f32 %v3584_v4, %v306_v0  ;;  %v271_v56 = vld [vmem:[%s3579_s30 + $0x120] sm:$0xff]  ;;  %v272_v0 = vld [vmem:[%s3579_s30 + $0x128] sm:$0xff] }
  0x2d   : > { %3162 = vmatmul.mubr.msk.bf16.vlgmr.msra.gmra.mxu1 %vm704_vm1, %v3707_v10  ;;  %v533_v15 = vrot.slane %v531_v6, 1  ;;  %v538_v16 = vrot.slane %v536_v7, 1  ;;  %v368_v18 = vadd.f32 %v3584_v4, %v307_v8  ;;  %v625_v22 = vshrl.u32 %v3709_v11, 16 }
  0x2e   : > { %3178 = vmatpush3.bf16.msra.mxu1 %v3562_v1  ;;  %v627_v23 = vshll.u32 %v3709_v11, 16  ;;  %v632_v24 = vshll.u32 %v3711_v12, 16  ;;  %v420_v25 = vmax.f32 %v366_v13, 0.0  ;;  %v421_v27 = vmax.f32 %v367_v17, 0.0 }
  0x2f   : > { %v534_v26 = vor.u32 %v533_v15, %v529_v5  ;;  %v422_v30 = vmax.f32 %v368_v18, 0.0  ;;  %v329_v31 = vmul.f32 %v3573_v3, %v268_v14  ;;  %3245 = vmatprep.subr.bf16.mxu1 %v3704_v9  ;;  %v330_v1 = vmul.f32 %v3573_v3, %v269_v20 }
  0x30   : > { %v629_v33 = vrot.slane %v627_v23, 1  ;;  %v634_v36 = vrot.slane %v632_v24, 1  ;;  %v331_v39 = vmul.f32 %v3573_v3, %v270_v21  ;;  %v3733_v43 = vpack.c.bf16 %v421_v27, %v420_v25  ;;  %v250_v27 = vld [vmem:[%s3579_s30 + $0x78] sm:$0xff] }
  0x31   : > { %v3731_v40 = vsel %vm503_vm0, %v534_v26, %v538_v16  ;;  %v3735_v44 = vpack.c.bf16 %v422_v30, %v422_v30  ;;  %v390_v45 = vadd.f32 %v3584_v4, %v329_v31  ;;  %v391_v48 = vadd.f32 %v3584_v4, %v330_v1  ;;  %v273_v16 = vld [vmem:[%s3579_s30 + $0x130] sm:$0x3] }
  0x32   : > { %3149 = vmatprep.mubr.msk.bf16.mxu0 %vm704_vm1, %v3731_v40  ;;  %v630_v47 = vor.u32 %v629_v33, %v625_v22  ;;  %v392_v49 = vadd.f32 %v3584_v4, %v331_v39  ;;  %v308_v51 = vmul.f32 %v3573_v3, %v247_v32  ;;  %v541_v52 = vshrl.u32 %v3733_v43, 16 }
  0x33   : > { %v543_v53 = vshll.u32 %v3733_v43, 16  ;;  %v548_v54 = vshll.u32 %v3735_v44, 16  ;;  %v444_v55 = vmax.f32 %v390_v45, 0.0  ;;  %v445_v60 = vmax.f32 %v391_v48, 0.0 }
  0x34   : > { %v3750_v59 = vsel %vm503_vm0, %v630_v47, %v634_v36  ;;  %v446_v62 = vmax.f32 %v392_v49, 0.0  ;;  %v309_v63 = vmul.f32 %v3573_v3, %v248_v46  ;;  %v310_v7 = vmul.f32 %v3573_v3, %v249_v50  ;;  %v251_v46 = vld [vmem:[%s3579_s30 + $0x80] sm:$0xff]  ;;  %v252_v47 = vld [vmem:[%s3579_s30 + $0x88] sm:$0x3] }
  0x35   : > { %3165 = vmatprep.mubr.msk.bf16.mxu1 %vm704_vm1, %v3750_v59  ;;  %v545_v5 = vrot.slane %v543_v53, 1  ;;  %v550_v6 = vrot.slane %v548_v54, 1  ;;  %v369_v8 = vadd.f32 %v3584_v4, %v308_v51  ;;  %v3758_v13 = vpack.c.bf16 %v445_v60, %v444_v55 }
  0x36   : > { %v3760_v14 = vpack.c.bf16 %v446_v62, %v446_v62  ;;  %v370_v15 = vadd.f32 %v3584_v4, %v309_v63  ;;  %v332_v17 = vmul.f32 %v3573_v3, %v271_v56  ;;  %v371_v20 = vadd.f32 %v3584_v4, %v310_v7 }
  0x37   : > { %v546_v18 = vor.u32 %v545_v5, %v541_v52  ;;  %v423_v21 = vmax.f32 %v369_v8, 0.0  ;;  %v333_v22 = vmul.f32 %v3573_v3, %v272_v0  ;;  %v637_v23 = vshrl.u32 %v3758_v13, 16  ;;  %v274_v8 = vld [vmem:[%s3579_s30 + $0x138] sm:$0xff] }
  0x38   : > { %v639_v24 = vshll.u32 %v3758_v13, 16  ;;  %v644_v25 = vshll.u32 %v3760_v14, 16  ;;  %v424_v26 = vmax.f32 %v370_v15, 0.0  ;;  %v425_v31 = vmax.f32 %v371_v20, 0.0  ;;  %v275_v20 = vld [vmem:[%s3579_s30 + $0x140] sm:$0xff] }
  0x39   : > { %v3772_v30 = vsel %vm503_vm0, %v546_v18, %v550_v6  ;;  %v334_v32 = vmul.f32 %v3573_v3, %v273_v16  ;;  %v393_v33 = vadd.f32 %v3584_v4, %v332_v17  ;;  %v394_v45 = vadd.f32 %v3584_v4, %v333_v22 }
  0x3a   : > { %3150 = vmatmul.mubr.msk.bf16.gmra.mxu0 %vm704_vm1, %v3772_v30  ;;  %v641_v36 = vrot.slane %v639_v24, 1  ;;  %v646_v1 = vrot.slane %v644_v25, 1  ;;  %v3778_v39 = vpack.c.bf16 %v424_v26, %v423_v21  ;;  %v3783_v48 = vpack.c.bf16 %v425_v31, %v425_v31  ;;  %v276_v21 = vld [vmem:[%s3579_s30 + $0x148] sm:$0x3] }
  0x3b   : > { %v395_v49 = vadd.f32 %v3584_v4, %v334_v32  ;;  %v447_v50 = vmax.f32 %v393_v33, 0.0  ;;  %v311_v51 = vmul.f32 %v3573_v3, %v250_v27  ;;  %v448_v55 = vmax.f32 %v394_v45, 0.0  ;;  %v253_v33 = vld [vmem:[%s3579_s30 + $0x90] sm:$0xff] }
  0x3c   : > { %v642_v52 = vor.u32 %v641_v36, %v637_v23  ;;  %v553_v53 = vshrl.u32 %v3778_v39, 16  ;;  %v555_v54 = vshll.u32 %v3778_v39, 16  ;;  %v560_v56 = vshll.u32 %v3783_v48, 16 }
  0x3d   : > { %v449_v60 = vmax.f32 %v395_v49, 0.0  ;;  %v312_v62 = vmul.f32 %v3573_v3, %v251_v46  ;;  %v313_v63 = vmul.f32 %v3573_v3, %v252_v47  ;;  %v3795_v6 = vpack.c.bf16 %v448_v55, %v447_v50 }
  0x3e   : > { %v3793_v0 = vsel %vm503_vm0, %v642_v52, %v646_v1  ;;  %v557_v5 = vrot.slane %v555_v54, 1  ;;  %v372_v7 = vadd.f32 %v3584_v4, %v311_v51  ;;  %v562_v15 = vrot.slane %v560_v56, 1  ;;  %v254_v52 = vld [vmem:[%s3579_s30 + $0x98] sm:$0xff]  ;;  %v255_v56 = vld [vmem:[%s3579_s30 + $0xa0] sm:$0x3] }
  0x3f   : > { %3166 = vmatmul.mubr.msk.bf16.gmra.mxu1 %vm704_vm1, %v3793_v0  ;;  %v3801_v16 = vpack.c.bf16 %v449_v60, %v449_v60  ;;  %v373_v17 = vadd.f32 %v3584_v4, %v312_v62  ;;  %v374_v18 = vadd.f32 %v3584_v4, %v313_v63  ;;  %v649_v23 = vshrl.u32 %v3795_v6, 16 }
  0x40   : > { %v558_v22 = vor.u32 %v557_v5, %v553_v53  ;;  %v651_v24 = vshll.u32 %v3795_v6, 16  ;;  %v426_v25 = vmax.f32 %v372_v7, 0.0  ;;  %v335_v32 = vmul.f32 %v3573_v3, %v274_v8  ;;  %v277_v8 = vld [vmem:[%s3579_s30 + $0x150] sm:$0xff] }
  0x41   : > { %v656_v26 = vshll.u32 %v3801_v16, 16  ;;  %v427_v27 = vmax.f32 %v373_v17, 0.0  ;;  %v428_v31 = vmax.f32 %v374_v18, 0.0  ;;  %v336_v45 = vmul.f32 %v3573_v3, %v275_v20 }
  0x42   : > { %v3813_v36 = vsel %vm503_vm0, %v558_v22, %v562_v15  ;;  %v653_v1 = vrot.slane %v651_v24, 1  ;;  %v337_v46 = vmul.f32 %v3573_v3, %v276_v21  ;;  %v396_v51 = vadd.f32 %v3584_v4, %v335_v32  ;;  %v278_v21 = vld [vmem:[%s3579_s30 + $0x158] sm:$0xff]  ;;  %v279_v32 = vld [vmem:[%s3579_s30 + $0x160] sm:$0x3] }
  0x43   : > { %3153 = vmatprep.mubr.msk.bf16.mxu0 %vm704_vm1, %v3813_v36  ;;  %v658_v47 = vrot.slane %v656_v26, 1  ;;  %v3819_v49 = vpack.c.bf16 %v427_v27, %v426_v25  ;;  %v3821_v50 = vpack.c.bf16 %v428_v31, %v428_v31  ;;  %v397_v54 = vadd.f32 %v3584_v4, %v336_v45 }
  0x44   : > { %v654_v53 = vor.u32 %v653_v1, %v649_v23  ;;  %v398_v55 = vadd.f32 %v3584_v4, %v337_v46  ;;  %v314_v60 = vmul.f32 %v3573_v3, %v253_v33  ;;  %v450_v7 = vmax.f32 %v396_v51, 0.0 }
  0x45   : > { %v565_v62 = vshrl.u32 %v3819_v49, 16  ;;  %v567_v63 = vshll.u32 %v3819_v49, 16  ;;  %v572_v5 = vshll.u32 %v3821_v50, 16  ;;  %v451_v17 = vmax.f32 %v397_v54, 0.0 }
  0x46   : > { %v3834_v15 = vsel %vm503_vm0, %v654_v53, %v658_v47  ;;  %v452_v18 = vmax.f32 %v398_v55, 0.0  ;;  %v315_v20 = vmul.f32 %v3573_v3, %v254_v52  ;;  %v316_v24 = vmul.f32 %v3573_v3, %v255_v56  ;;  %v256_v55 = vld [vmem:[%s3579_s30 + $0xa8] sm:$0xff] }
  0x47   : > { %3169 = vmatprep.mubr.msk.bf16.mxu1 %vm704_vm1, %v3834_v15  ;;  %v569_v22 = vrot.slane %v567_v63, 1  ;;  %v574_v23 = vrot.slane %v572_v5, 1  ;;  %v375_v25 = vadd.f32 %v3584_v4, %v314_v60  ;;  %v3842_v26 = vpack.c.bf16 %v451_v17, %v450_v7 }
  0x48   : > { %v3844_v27 = vpack.c.bf16 %v452_v18, %v452_v18  ;;  %v376_v31 = vadd.f32 %v3584_v4, %v315_v20  ;;  %v338_v33 = vmul.f32 %v3573_v3, %v277_v8  ;;  %v377_v45 = vadd.f32 %v3584_v4, %v316_v24  ;;  %v257_v18 = vld [vmem:[%s3579_s30 + $0xb0] sm:$0xff]  ;;  %v258_v20 = vld [vmem:[%s3579_s30 + $0xb8] sm:$0x3] }
  0x49   : > { %v570_v1 = vor.u32 %v569_v22, %v565_v62  ;;  %v429_v46 = vmax.f32 %v375_v25, 0.0  ;;  %v339_v47 = vmul.f32 %v3573_v3, %v278_v21  ;;  %v661_v51 = vshrl.u32 %v3842_v26, 16 }
  0x4a   : > { %v663_v52 = vshll.u32 %v3842_v26, 16  ;;  %v668_v53 = vshll.u32 %v3844_v27, 16  ;;  %v430_v54 = vmax.f32 %v376_v31, 0.0  ;;  %v431_v60 = vmax.f32 %v377_v45, 0.0 }
  0x4b   : > { %v3856_v56 = vsel %vm503_vm0, %v570_v1, %v574_v23  ;;  %v340_v62 = vmul.f32 %v3573_v3, %v279_v32  ;;  %v399_v63 = vadd.f32 %v3584_v4, %v338_v33  ;;  %v400_v17 = vadd.f32 %v3584_v4, %v339_v47 }
  0x4c   : > { %3154 = vmatmul.mubr.msk.bf16.gmra.mxu0 %vm704_vm1, %v3856_v56  ;;  %v665_v5 = vrot.slane %v663_v52, 1  ;;  %v670_v7 = vrot.slane %v668_v53, 1  ;;  %v3862_v8 = vpack.c.bf16 %v430_v54, %v429_v46  ;;  %v3867_v21 = vpack.c.bf16 %v431_v60, %v431_v60 }
  0x4d   : > { %v401_v22 = vadd.f32 %v3584_v4, %v340_v62  ;;  %v453_v23 = vmax.f32 %v399_v63, 0.0  ;;  %v317_v24 = vmul.f32 %v3573_v3, %v256_v55  ;;  %v454_v33 = vmax.f32 %v400_v17, 0.0  ;;  %v280_v55 = vld [vmem:[%s3579_s30 + $0x168] sm:$0xff]  ;;  %v281_v17 = vld [vmem:[%s3579_s30 + $0x170] sm:$0xff] }
  0x4e   : > { %v666_v25 = vor.u32 %v665_v5, %v661_v51  ;;  %v577_v31 = vshrl.u32 %v3862_v8, 16  ;;  %v579_v32 = vshll.u32 %v3862_v8, 16  ;;  %v584_v1 = vshll.u32 %v3867_v21, 16 }
  0x4f   : > { %v455_v45 = vmax.f32 %v401_v22, 0.0  ;;  %v318_v46 = vmul.f32 %v3573_v3, %v257_v18  ;;  %v319_v47 = vmul.f32 %v3573_v3, %v258_v20  ;;  %v3879_v54 = vpack.c.bf16 %v454_v33, %v453_v23  ;;  %v282_v18 = vld [vmem:[%s3579_s30 + $0x178] sm:$0x3] }
  0x50   : > { %v3877_v52 = vsel %vm503_vm0, %v666_v25, %v670_v7  ;;  %v581_v53 = vrot.slane %v579_v32, 1  ;;  %v378_v51 = vadd.f32 %v3584_v4, %v317_v24  ;;  %v586_v60 = vrot.slane %v584_v1, 1 }
  0x51   : > { %4895 = vst [vmem:[#allocation2_spill] sm:$0xff] %v3877_v52  ;;  %3170 = vmatmul.mubr.msk.bf16.gmra.mxu1 %vm704_vm1, %v3877_v52  ;;  %v3885_v62 = vpack.c.bf16 %v455_v45, %v455_v45  ;;  %v379_v63 = vadd.f32 %v3584_v4, %v318_v46  ;;  %v380_v5 = vadd.f32 %v3584_v4, %v319_v47  ;;  %v673_v20 = vshrl.u32 %v3879_v54, 16 }
  0x52   : > { %v582_v7 = vor.u32 %v581_v53, %v577_v31  ;;  %v675_v22 = vshll.u32 %v3879_v54, 16  ;;  %v432_v23 = vmax.f32 %v378_v51, 0.0  ;;  %v341_v33 = vmul.f32 %v3573_v3, %v280_v55 }
  0x53   : > { %v680_v24 = vshll.u32 %v3885_v62, 16  ;;  %v433_v25 = vmax.f32 %v379_v63, 0.0  ;;  %v434_v32 = vmax.f32 %v380_v5, 0.0  ;;  %v342_v46 = vmul.f32 %v3573_v3, %v281_v17 }
  0x54   : > { %v3896_v1 = vsel %vm503_vm0, %v582_v7, %v586_v60  ;;  %v677_v45 = vrot.slane %v675_v22, 1  ;;  %v343_v47 = vmul.f32 %v3573_v3, %v282_v18  ;;  %v402_v63 = vadd.f32 %v3584_v4, %v341_v33 }
  0x55   : > { %3157 = vmatprep.mubr.msk.bf16.mxu0 %vm704_vm1, %v3896_v1  ;;  %v682_v31 = vrot.slane %v680_v24, 1  ;;  %v3902_v53 = vpack.c.bf16 %v433_v25, %v432_v23  ;;  %v3904_v51 = vpack.c.bf16 %v434_v32, %v434_v32  ;;  %v403_v55 = vadd.f32 %v3584_v4, %v342_v46 }
  0x56   : > { %v678_v5 = vor.u32 %v677_v45, %v673_v20  ;;  %v404_v60 = vadd.f32 %v3584_v4, %v343_v47  ;;  %v1146_v7 = vrot.slane %v3613_v37, 1  ;;  %v456_v24 = vmax.f32 %v402_v63, 0.0 }
  0x57   : > { %v589_v17 = vshrl.u32 %v3902_v53, 16  ;;  %v591_v18 = vshll.u32 %v3902_v53, 16  ;;  %v596_v22 = vshll.u32 %v3904_v51, 16  ;;  %v457_v25 = vmax.f32 %v403_v55, 0.0 }
  0x58   : > { %v3914_v23 = vsel %vm503_vm0, %v678_v5, %v682_v31  ;;  %v458_v32 = vmax.f32 %v404_v60, 0.0  ;;  %v1147_v20 = vrot.slane %v3615_v38, 1 }
  0x59   : > { %3173 = vmatprep.mubr.msk.bf16.mxu1 %vm704_vm1, %v3914_v23  ;;  %v593_v33 = vrot.slane %v591_v18, 1  ;;  %v598_v45 = vrot.slane %v596_v22, 1  ;;  %v3919_v46 = vpack.c.bf16 %v457_v25, %v456_v24  ;;  %v1150_v22 = vrot.slane %v3635_v61, 1 }
  0x5a   : > { %v3921_v47 = vpack.c.bf16 %v458_v32, %v458_v32  ;;  %v1148_v55 = vsel %vm1145_vm2, %v1146_v7, %v1147_v20  ;;  %v1152_v25 = vrot.slane %v3692_v58, 1  ;;  %v1153_v32 = vrot.slane %v3694_v2, 1  ;;  %v3953_v20 = vld [vmem:[%s4890_s3 + $0x30] sm:$0xff]  }
  0x5b   : > { %v594_v52 = vor.u32 %v593_v33, %v589_v17  ;;  %v685_v63 = vshrl.u32 %v3919_v46, 16  ;;  %v687_v31 = vshll.u32 %v3919_v46, 16  ;;  %v1149_v17 = vrot.slane %v3632_v57, 1 }
  0x5c   : > { %v692_v5 = vshll.u32 %v3921_v47, 16  ;;  %v3948_v61 = vsel %vm1145_vm2, %v1152_v25, %v1153_v32  ;;  %v1155_v2 = vrot.slane %v3733_v43, 1  ;;  %v1158_v33 = vrot.slane %v3778_v39, 1 }
  0x5d   : > { %v3928_v38 = vsel %vm503_vm0, %v594_v52, %v598_v45  ;;  %v689_v60 = vrot.slane %v687_v31, 1  ;;  %v3943_v52 = vsel %vm1145_vm2, %v1149_v17, %v1150_v22  ;;  %v1159_v45 = vrot.slane %v3783_v48, 1 }
  0x5e   : > { %3158 = vmatmul.mubr.msk.bf16.gmra.mxu0 %vm704_vm1, %v3928_v38  ;;  %v694_v18 = vrot.slane %v692_v5, 1  ;;  %v1161_v48 = vrot.slane %v3819_v49, 1  ;;  %v1162_v31 = vrot.slane %v3821_v50, 1  ;;  %v1165_v5 = vrot.slane %v3867_v21, 1 }
  0x5f   : > { %3213 = vmatprep.mubr.msk.bf16.mxu0 %vm704_vm1, %v1148_v55  ;;  %v690_v24 = vor.u32 %v689_v60, %v685_v63  ;;  %v3968_v63 = vld [vmem:[%s4890_s3 + $0x28] sm:$0xff]   ;;  %v1167_v50 = vrot.slane %v3902_v53, 1  ;;  %v1168_v21 = vrot.slane %v3904_v51, 1  ;;  %v1171_v22 = vrot.slane %v3621_v42, 1 }
  0x60   : > { %v3993_v55 = vsel %vm1145_vm2, %v1161_v48, %v1162_v31  ;;  %v1173_v42 = vrot.slane %v3665_v29, 1  ;;  %v1174_v51 = vrot.slane %v3674_v35, 1  ;;  %v1176_v25 = vrot.slane %v3709_v11, 1 }
  0x61   : > { %v3938_v7 = vsel %vm503_vm0, %v690_v24, %v694_v18  ;;  %v1170_v18 = vrot.slane %v3619_v41, 1  ;;  %v4011_v17 = vsel %vm1145_vm2, %v1167_v50, %v1168_v21  ;;  %v1177_v32 = vrot.slane %v3711_v12, 1 }
  0x62   : > { %3174 = vmatmul.mubr.msk.bf16.gmra.mxu1 %vm704_vm1, %v3938_v7  ;;  %v1179_v35 = vrot.slane %v3758_v13, 1  ;;  %v1180_v12 = vrot.slane %v3760_v14, 1  ;;  %v1185_v14 = vrot.slane %v3842_v26, 1 }
  0x63   : > { %3179 = vmatprep.mubr.msk.bf16.mxu1 %vm704_vm1, %v3613_v37  ;;  %v1156_v37 = vrot.slane %v3735_v44, 1  ;;  %v3979_v44 = vsel %vm1145_vm2, %v1158_v33, %v1159_v45  ;;  %v4016_v24 = vsel %vm1145_vm2, %v1170_v18, %v1171_v22  ;;  %v1182_v33 = vrot.slane %v3795_v6, 1 }
  0x64   : > { %v1183_v45 = vrot.slane %v3801_v16, 1  ;;  %v4047_v48 = vsel %vm1145_vm2, %v1179_v35, %v1180_v12  ;;  %v1186_v16 = vrot.slane %v3844_v27, 1  ;;  %v1191_v27 = vrot.slane %v3919_v46, 1 }
  0x66   : > { %3214 = vmatmul.mubr.msk.bf16.vlgmr.msra.gmra.mxu0 %vm704_vm1, %v3943_v52  ;;  %v4052_v31 = vsel %vm1145_vm2, %v1182_v33, %v1183_v45  ;;  %v4065_v50 = vsel %vm1145_vm2, %v1185_v14, %v1186_v16 }
  0x67   : > { %3280 = vmatpush3.bf16.msra.mxu0 %v3663_v28  ;;  %3217 = vmatprep.mubr.msk.bf16.mxu0 %vm704_vm1, %v3948_v61  ;;  %v3973_v28 = vsel %vm1145_vm2, %v1155_v2, %v1156_v37  ;;  %v4029_v2 = vsel %vm1145_vm2, %v1173_v42, %v1174_v51  ;;  %v4034_v37 = vsel %vm1145_vm2, %v1176_v25, %v1177_v32  ;;  %v285_v42 = vld [vmem:[%s3579_s30 + $0x190] sm:$0x3] }
  0x68   : > { %3347 = vmatprep.subr.bf16.mxu0 %v3953_v20  ;;  %v346_v32 = vmul.f32 %v3573_v3, %v285_v42 }
  0x6a   : > { %3180 = vmatmul.mubr.msk.bf16.vlgmr.msra.gmra.mxu1 %vm704_vm1, %v3632_v57  ;;  %v407_v33 = vadd.f32 %v3584_v4, %v346_v32 }
  0x6b   : > { %3246 = vmatpush3.bf16.msra.mxu1 %v3704_v9  ;;  %3183 = vmatprep.mubr.msk.bf16.mxu1 %vm704_vm1, %v3692_v58  ;;  %v1164_v9 = vrot.slane %v3862_v8, 1 }
  0x6c   : > { %3313 = vmatprep.subr.bf16.mxu1 %v3968_v63  ;;  %v461_v14 = vmax.f32 %v407_v33, 0.0 }
  0x6d   : > { %v3998_v60 = vsel %vm1145_vm2, %v1164_v9, %v1165_v5  ;;  %v1188_v9 = vrot.slane %v3879_v54, 1  ;;  %v1189_v5 = vrot.slane %v3885_v62, 1  ;;  %v1192_v62 = vrot.slane %v3921_v47, 1  ;;  %v3484_v47 = vld [vmem:[%s4890_s3 + $0x40] sm:$0xff]  }
  0x6e   : > { %3218 = vmatmul.mubr.msk.bf16.gmra.mxu0 %vm704_vm1, %v3973_v28  ;;  %v4156_v16 = vpack.c.bf16 %v461_v14, %v461_v14 }
  0x6f   : > { %3221 = vmatprep.mubr.msk.bf16.mxu0 %vm704_vm1, %v3979_v44  ;;  %v4070_v21 = vsel %vm1145_vm2, %v1188_v9, %v1189_v5  ;;  %v4081_v18 = vsel %vm1145_vm2, %v1191_v27, %v1192_v62 }
  0x70   : > { %v1654_v27 = vshll.u32 %v4156_v16, 16 }
  0x72   : > { %3184 = vmatmul.mubr.msk.bf16.gmra.mxu1 %vm704_vm1, %v3733_v43 }
  0x73   : > { %3187 = vmatprep.mubr.msk.bf16.mxu1 %vm704_vm1, %v3778_v39 }
  0x76   : > { %3222 = vmatmul.mubr.msk.bf16.gmra.mxu0 %vm704_vm1, %v3993_v55 }
  0x77   : > { %3225 = vmatprep.mubr.msk.bf16.mxu0 %vm704_vm1, %v3998_v60 }
  0x7a   : > { %3188 = vmatmul.mubr.msk.bf16.gmra.mxu1 %vm704_vm1, %v3819_v49 }
  0x7b   : > { %3191 = vmatprep.mubr.msk.bf16.mxu1 %vm704_vm1, %v3862_v8 }
  0x7e   : > { %3226 = vmatmul.mubr.msk.bf16.gmra.mxu0 %vm704_vm1, %v4011_v17 }
  0x7f   : > { %3229 = vmatprep.mubr.msk.bf16.mxu0 %vm704_vm1, %v4016_v24 }
  0x82   : > { %3192 = vmatmul.mubr.msk.bf16.gmra.mxu1 %vm704_vm1, %v3902_v53 }
  0x83   : > { %3195 = vmatprep.mubr.msk.bf16.mxu1 %vm704_vm1, %v3619_v41 }
  0x86   : > { %3230 = vmatmul.mubr.msk.bf16.gmra.mxu0 %vm704_vm1, %v4029_v2 }
  0x87   : > { %3233 = vmatprep.mubr.msk.bf16.mxu0 %vm704_vm1, %v4034_v37 }
  0x8a   : > { %3196 = vmatmul.mubr.msk.bf16.gmra.mxu1 %vm704_vm1, %v3665_v29 }
  0x8b   : > { %3199 = vmatprep.mubr.msk.bf16.mxu1 %vm704_vm1, %v3709_v11 }
  0x8e   : > { %3234 = vmatmul.mubr.msk.bf16.gmra.mxu0 %vm704_vm1, %v4047_v48 }
  0x8f   : > { %3237 = vmatprep.mubr.msk.bf16.mxu0 %vm704_vm1, %v4052_v31 }
  0x92   : > { %3200 = vmatmul.mubr.msk.bf16.gmra.mxu1 %vm704_vm1, %v3758_v13 }
  0x93   : > { %3203 = vmatprep.mubr.msk.bf16.mxu1 %vm704_vm1, %v3795_v6 }
  0x96   : > { %3238 = vmatmul.mubr.msk.bf16.gmra.mxu0 %vm704_vm1, %v4065_v50 }
  0x97   : > { %3241 = vmatprep.mubr.msk.bf16.mxu0 %vm704_vm1, %v4070_v21 }
  0x9a   : > { %3204 = vmatmul.mubr.msk.bf16.gmra.mxu1 %vm704_vm1, %v3842_v26 }
  0x9b   : > { %3207 = vmatprep.mubr.msk.bf16.mxu1 %vm704_vm1, %v3879_v54 }
  0x9e   : > { %3242 = vmatmul.mubr.msk.bf16.gmra.mxu0 %vm704_vm1, %v4081_v18 }
  0x9f   : > { %3281 = vmatprep.mubr.msk.bf16.mxu0 %vm704_vm1, %v3672_v34  ;;  %v3483_v34 = vld [vmem:[%s4890_s3 + $0x38] sm:$0xff]  }
  0xa2   : > { %3208 = vmatmul.mubr.msk.bf16.gmra.mxu1 %vm704_vm1, %v3919_v46 }
  0xa3   : > { %3247 = vmatprep.mubr.msk.bf16.mxu1 %vm704_vm1, %v3632_v57  ;;  %v283_v57 = vld [vmem:[%s3579_s30 + $0x180] sm:$0xff] }
  0xa6   : > { %3282 = vmatmul.mubr.msk.bf16.vlgmr.msra.gmra.mxu0 %vm704_vm1, %v3731_v40 }
  0xa7   : > { %3348 = vmatpush3.bf16.msra.mxu0 %v3953_v20  ;;  %3285 = vmatprep.mubr.msk.bf16.mxu0 %vm704_vm1, %v3772_v30  ;;  %v284_v20 = vld [vmem:[%s3579_s30 + $0x188] sm:$0xff] }
  0xa8   : > { %3415 = vmatprep.subr.bf16.mxu0 %v3484_v47  ;;  %v345_v22 = vmul.f32 %v3573_v3, %v284_v20 }
  0xaa   : > { %3248 = vmatmul.mubr.msk.bf16.vlgmr.msra.gmra.mxu1 %vm704_vm1, %v3692_v58  ;;  %v406_v25 = vadd.f32 %v3584_v4, %v345_v22 }
  0xab   : > { %3314 = vmatpush3.bf16.msra.mxu1 %v3968_v63  ;;  %3251 = vmatprep.mubr.msk.bf16.mxu1 %vm704_vm1, %v3733_v43  ;;  %v344_v63 = vmul.f32 %v3573_v3, %v283_v57  ;;  %v4896_v3 = vld [vmem:[#allocation2_spill] sm:$0xff]  ;;  %v1656_v57 = vrot.slane %v1654_v27, 1 }
  0xac   : > { %3381 = vmatprep.subr.bf16.mxu1 %v3483_v34  ;;  %v460_v12 = vmax.f32 %v406_v25, 0.0  ;;  %v287_v25 = vld [vmem:[%s3579_s30 + $0x1a0] sm:$0xff] }
  0xad   : > { %v405_v51 = vadd.f32 %v3584_v4, %v344_v63 }
  0xae   : > { %3286 = vmatmul.mubr.msk.bf16.gmra.mxu0 %vm704_vm1, %v3813_v36 }
  0xaf   : > { %3289 = vmatprep.mubr.msk.bf16.mxu0 %vm704_vm1, %v3856_v56  ;;  %v459_v35 = vmax.f32 %v405_v51, 0.0  ;;  %v286_v51 = vld [vmem:[%s3579_s30 + $0x198] sm:$0xff] }
  0xb1   : > { %v4148_v45 = vpack.c.bf16 %v460_v12, %v459_v35 }
  0xb2   : > { %3252 = vmatmul.mubr.msk.bf16.gmra.mxu1 %vm704_vm1, %v3778_v39 }
  0xb3   : > { %3255 = vmatprep.mubr.msk.bf16.mxu1 %vm704_vm1, %v3819_v49  ;;  %v1649_v9 = vshll.u32 %v4148_v45, 16  ;;  %v1647_v4 = vshrl.u32 %v4148_v45, 16 }
  0xb5   : > { %v1651_v5 = vrot.slane %v1649_v9, 1 }
  0xb6   : > { %3290 = vmatmul.mubr.msk.bf16.gmra.mxu0 %vm704_vm1, %v3896_v1 }
  0xb7   : > { %3293 = vmatprep.mubr.msk.bf16.mxu0 %vm704_vm1, %v3928_v38  ;;  %v1652_v62 = vor.u32 %v1651_v5, %v1647_v4 }
  0xb9   : > { %v4172_v20 = vsel %vm503_vm0, %v1652_v62, %v1656_v57 }
  0xba   : > { %3256 = vmatmul.mubr.msk.bf16.gmra.mxu1 %vm704_vm1, %v3862_v8  ;;  %4897 = vst [vmem:[#allocation2_spill] sm:$0xff] %v4172_v20 }
  0xbb   : > { %3259 = vmatprep.mubr.msk.bf16.mxu1 %vm704_vm1, %v3902_v53 }
  0xbe   : > { %3294 = vmatmul.mubr.msk.bf16.gmra.mxu0 %vm704_vm1, %v3652_v19 }
  0xbf   : > { %3297 = vmatprep.mubr.msk.bf16.mxu0 %vm704_vm1, %v3707_v10 }
  0xc2   : > { %3260 = vmatmul.mubr.msk.bf16.gmra.mxu1 %vm704_vm1, %v3619_v41 }
  0xc3   : > { %3263 = vmatprep.mubr.msk.bf16.mxu1 %vm704_vm1, %v3665_v29 }
  0xc6   : > { %3298 = vmatmul.mubr.msk.bf16.gmra.mxu0 %vm704_vm1, %v3750_v59 }
  0xc7   : > { %3301 = vmatprep.mubr.msk.bf16.mxu0 %vm704_vm1, %v3793_v0 }
  0xca   : > { %3264 = vmatmul.mubr.msk.bf16.gmra.mxu1 %vm704_vm1, %v3709_v11 }
  0xcb   : > { %3267 = vmatprep.mubr.msk.bf16.mxu1 %vm704_vm1, %v3758_v13 }
  0xce   : > { %3302 = vmatmul.mubr.msk.bf16.gmra.mxu0 %vm704_vm1, %v3834_v15 }
  0xcf   : > { %3305 = vmatprep.mubr.msk.bf16.mxu0 %vm704_vm1, %v4896_v3 }
  0xd2   : > { %3268 = vmatmul.mubr.msk.bf16.gmra.mxu1 %vm704_vm1, %v3795_v6 }
  0xd3   : > { %3271 = vmatprep.mubr.msk.bf16.mxu1 %vm704_vm1, %v3842_v26 }
  0xd6   : > { %3306 = vmatmul.mubr.msk.bf16.gmra.mxu0 %vm704_vm1, %v3914_v23 }
  0xd7   : > { %3309 = vmatprep.mubr.msk.bf16.mxu0 %vm704_vm1, %v3938_v7 }
  0xda   : > { %3272 = vmatmul.mubr.msk.bf16.gmra.mxu1 %vm704_vm1, %v3879_v54 }
  0xdb   : > { %3275 = vmatprep.mubr.msk.bf16.mxu1 %vm704_vm1, %v3919_v46 }
  0xde   : > { %3310 = vmatmul.mubr.msk.bf16.gmra.mxu0 %vm704_vm1, %v4172_v20 }
  0xdf   : > { %3349 = vmatprep.mubr.msk.bf16.mxu0 %vm704_vm1, %v3692_v58 }
  0xe2   : > { %3276 = vmatmul.mubr.msk.bf16.gmra.mxu1 %vm704_vm1, %v4148_v45 }
  0xe3   : > { %3315 = vmatprep.mubr.msk.bf16.mxu1 %vm704_vm1, %v3943_v52 }
  0xe6   : > { %3350 = vmatmul.mubr.msk.bf16.vlgmr.msra.gmra.mxu0 %vm704_vm1, %v3733_v43  ;;  %v4194_v58 = vpop.f32.mrf.mxu0 }
  0xe7   : > { %3416 = vmatpush3.bf16.msra.mxu0 %v3484_v47  ;;  %3353 = vmatprep.mubr.msk.bf16.mxu0 %vm704_vm1, %v3778_v39 }
  0xe8   : > { %v4198_v43 = vpop.f32.mrf.mxu0 }
  0xea   : > { %3316 = vmatmul.mubr.msk.bf16.vlgmr.msra.gmra.mxu1 %vm704_vm1, %v3948_v61  ;;  %v4208_v52 = vpop.f32.mrf.mxu0 }
  0xeb   : > { %3382 = vmatpush3.bf16.msra.mxu1 %v3483_v34  ;;  %3319 = vmatprep.mubr.msk.bf16.mxu1 %vm704_vm1, %v3973_v28 }
  0xed   : > { %v4202_v39 = vpop.f32.mrf.mxu1 }
  0xee   : > { %3354 = vmatmul.mubr.msk.bf16.gmra.mxu0 %vm704_vm1, %v3819_v49 }
  0xef   : > { %3357 = vmatprep.mubr.msk.bf16.mxu0 %vm704_vm1, %v3862_v8  ;;  %v4212_v49 = vpop.f32.mrf.mxu1  ;;  %v4214_v8 = vpop.f32.mrf.mxu0 }
  0xf1   : > { %v4218_v47 = vpop.f32.mrf.mxu1 }
  0xf2   : > { %3320 = vmatmul.mubr.msk.bf16.gmra.mxu1 %vm704_vm1, %v3979_v44 }
  0xf3   : > { %3323 = vmatprep.mubr.msk.bf16.mxu1 %vm704_vm1, %v3993_v55 }
  0xf6   : > { %3358 = vmatmul.mubr.msk.bf16.gmra.mxu0 %vm704_vm1, %v3902_v53 }
  0xf7   : > { %3361 = vmatprep.mubr.msk.bf16.mxu0 %vm704_vm1, %v3619_v41  ;;  %v4228_v41 = vpop.f32.mrf.mxu1 }
  0xfa   : > { %3324 = vmatmul.mubr.msk.bf16.gmra.mxu1 %vm704_vm1, %v3998_v60  ;;  %v4224_v53 = vpop.f32.mrf.mxu0 }
  0xfb   : > { %3327 = vmatprep.mubr.msk.bf16.mxu1 %vm704_vm1, %v4011_v17 }
  0xfc   : > { %v4230_v34 = vpop.f32.mrf.mxu0 }
  0xfe   : > { %3362 = vmatmul.mubr.msk.bf16.gmra.mxu0 %vm704_vm1, %v3665_v29  ;;  %v4240_v29 = vpop.f32.mrf.mxu0 }
  0xff   : > { %3365 = vmatprep.mubr.msk.bf16.mxu0 %vm704_vm1, %v3709_v11  ;;  %v4234_v63 = vpop.f32.mrf.mxu1 }
 0x100   : > { %v4246_v22 = vpop.f32.mrf.mxu0 }
 0x101   : > { %v4244_v11 = vpop.f32.mrf.mxu1 }
 0x102   : > { %3328 = vmatmul.mubr.msk.bf16.gmra.mxu1 %vm704_vm1, %v4016_v24 }
 0x103   : > { %3331 = vmatprep.mubr.msk.bf16.mxu1 %vm704_vm1, %v4029_v2  ;;  %v4250_v42 = vpop.f32.mrf.mxu1 }
 0x105   : > { %v4267_v12 = vpop.f32.mrf.mxu1 }
 0x106   : > { %3366 = vmatmul.mubr.msk.bf16.gmra.mxu0 %vm704_vm1, %v3758_v13 }
 0x107   : > { %3369 = vmatprep.mubr.msk.bf16.mxu0 %vm704_vm1, %v3795_v6  ;;  %v4263_v6 = vld [vmem:[%s4888_s1] ss:$0 sm:$0xff] }
 0x108   : > { %v347_v32 = vmul.f32 %v4263_v6, %v286_v51  ;;  %v348_v35 = vmul.f32 %v4263_v6, %v287_v25 }
 0x10a   : > { %3332 = vmatmul.mubr.msk.bf16.gmra.mxu1 %vm704_vm1, %v4034_v37 }
 0x10b   : > { %3335 = vmatprep.mubr.msk.bf16.mxu1 %vm704_vm1, %v4047_v48 }
 0x10c   : > { %v4258_v13 = vpop.f32.mrf.mxu0 }
 0x10e   : > { %3370 = vmatmul.mubr.msk.bf16.gmra.mxu0 %vm704_vm1, %v3842_v26  ;;  %v4271_v33 = vpop.f32.mrf.mxu0  ;;  %v4276_v26 = vld [vmem:[%s4889_s2] ss:$0 sm:$0xff] }
 0x10f   : > { %3373 = vmatprep.mubr.msk.bf16.mxu0 %vm704_vm1, %v3879_v54  ;;  %v408_v14 = vadd.f32 %v4276_v26, %v347_v32  ;;  %v409_v9 = vadd.f32 %v4276_v26, %v348_v35  ;;  %v1865_v32 = vrot.slane %v4156_v16, 1 }
 0x110   : > { %v4288_v54 = vpop.f32.mrf.mxu0 }
 0x111   : > { %v4282_v4 = vpop.f32.mrf.mxu1  ;;  %v462_v5 = vmax.f32 %v408_v14, 0.0  ;;  %v463_v27 = vmax.f32 %v409_v9, 0.0 }
 0x112   : > { %3336 = vmatmul.mubr.msk.bf16.gmra.mxu1 %vm704_vm1, %v4052_v31  ;;  %4898 = vst [vmem:[#allocation3_spill] sm:$0xff] %v4282_v4  ;;  %v4294_v57 = vpop.f32.mrf.mxu0 }
 0x113   : > { %3339 = vmatprep.mubr.msk.bf16.mxu1 %vm704_vm1, %v4065_v50  ;;  %v4290_v62 = vpop.f32.mrf.mxu1  ;;  %v4296_v51 = vpack.c.bf16 %v463_v27, %v462_v5 }
 0x114   : > { %4899 = vst [vmem:[#allocation4_spill] sm:$0xff] %v4290_v62 }
 0x115   : > { %v4300_v25 = vpop.f32.mrf.mxu1 }
 0x116   : > { %3374 = vmatmul.mubr.msk.bf16.gmra.mxu0 %vm704_vm1, %v3919_v46  ;;  %4900 = vst [vmem:[#allocation5_spill] sm:$0xff] %v4300_v25  ;;  %v1864_v46 = vrot.slane %v4148_v45, 1 }
 0x117   : > { %3377 = vmatprep.mubr.msk.bf16.mxu0 %vm704_vm1, %v4148_v45  ;;  %v4310_v14 = vpop.f32.mrf.mxu1 }
 0x118   : > { %4901 = vst [vmem:[#allocation6_spill] sm:$0xff] %v4310_v14  ;;  %v4315_v9 = vsel %vm1145_vm2, %v1864_v46, %v1865_v32 }
 0x11a   : > { %3340 = vmatmul.mubr.msk.bf16.gmra.mxu1 %vm704_vm1, %v4070_v21 }
 0x11b   : > { %3343 = vmatprep.mubr.msk.bf16.mxu1 %vm704_vm1, %v4081_v18 }
 0x11e   : > { %v4306_v35 = vpop.f32.mrf.mxu0  ;;  %3378 = vmatmul.mubr.msk.bf16.gmra.mxu0 %vm704_vm1, %v4296_v51 }
 0x11f   : > { %3417 = vmatprep.mubr.msk.bf16.mxu0 %vm704_vm1, %v3948_v61 }
 0x120   : > { %v4317_v5 = vpop.f32.mrf.mxu0 }
 0x122   : > { %v4319_v27 = vpop.f32.mrf.mxu0  ;;  %v4321_v45 = vpop.f32.mrf.mxu1  ;;  %3344 = vmatmul.mubr.msk.bf16.gmra.mxu1 %vm704_vm1, %v4315_v9 }
 0x123   : > { %4902 = vst [vmem:[#allocation7_spill] sm:$0xff] %v4321_v45  ;;  %3383 = vmatprep.mubr.msk.bf16.mxu1 %vm704_vm1, %v3731_v40 }
 0x124   : > { %v4325_v16 = vpop.f32.mrf.mxu0  ;;  %v4329_v14 = vpop.f32.mrf.mxu1 }
 0x125   : > { %4903 = vst [vmem:[#allocation8_spill] sm:$0xff] %v4329_v14 }
 0x126   : > { %v3215_v61 = vpop.f32.mrf.mxu0  ;;  %3418 = vmatmul.mubr.msk.bf16.vlgmr.msra.gmra.mxu0 %vm704_vm1, %v3973_v28  ;;  %v4333_v46 = vpop.f32.mrf.mxu1 }
 0x127   : > { %4904 = vst [vmem:[#allocation9_spill] sm:$0xff] %v4333_v46  ;;  %3421 = vmatprep.mubr.msk.bf16.mxu0 %vm704_vm1, %v3979_v44 }
 0x128   : > { %v1284_v32 = vpop.f32.mrf.mxu0  ;;  %v4337_v45 = vpop.f32.mrf.mxu1 }
 0x129   : > { %4905 = vst [vmem:[#allocation10_spill] sm:$0xff] %v4337_v45 }
 0x12a   : > { %v3216_v25 = vpop.f32.mrf.mxu0  ;;  %v3181_v62 = vpop.f32.mrf.mxu1  ;;  %3384 = vmatmul.mubr.msk.bf16.vlgmr.msra.gmra.mxu1 %vm704_vm1, %v3772_v30 }
 0x12b   : > { %v995_v40 = vadd.f32 %v3181_v62, %v4194_v58  ;;  %3387 = vmatprep.mubr.msk.bf16.mxu1 %vm704_vm1, %v3813_v36 }
 0x12c   : > { %v1287_v14 = vpop.f32.mrf.mxu0  ;;  %v986_v28 = vpop.f32.mrf.mxu1 }
 0x12d   : > { %v4344_v20 = vadd.f32 %v3215_v61, %v995_v40  ;;  %v987_v46 = vadd.f32 %v986_v28, %v4198_v43 }
 0x12e   : > { %v3219_v44 = vpop.f32.mrf.mxu0  ;;  %3422 = vmatmul.mubr.msk.bf16.gmra.mxu0 %vm704_vm1, %v3993_v55  ;;  %v3182_v45 = vpop.f32.mrf.mxu1 }
 0x12f   : > { %3425 = vmatprep.mubr.msk.bf16.mxu0 %vm704_vm1, %v3998_v60  ;;  %v4351_v30 = vadd.f32 %v1284_v32, %v987_v46  ;;  %v998_v58 = vadd.f32 %v3182_v45, %v4208_v52 }
 0x130   : > { %v1300_v62 = vpop.f32.mrf.mxu0  ;;  %v989_v4 = vpop.f32.mrf.mxu1 }
 0x131   : > { %v4354_v36 = vadd.f32 %v3216_v25, %v998_v58  ;;  %v990_v61 = vadd.f32 %v989_v4, %v4214_v8 }
 0x132   : > { %v3220_v40 = vpop.f32.mrf.mxu0  ;;  %v3185_v43 = vpop.f32.mrf.mxu1  ;;  %3388 = vmatmul.mubr.msk.bf16.gmra.mxu1 %vm704_vm1, %v3856_v56 }
 0x133   : > { %v4359_v55 = vadd.f32 %v1287_v14, %v990_v61  ;;  %v1011_v28 = vadd.f32 %v3185_v43, %v4224_v53  ;;  %3391 = vmatprep.mubr.msk.bf16.mxu1 %vm704_vm1, %v3896_v1 }
 0x134   : > { %v1303_v60 = vpop.f32.mrf.mxu0  ;;  %v1002_v52 = vpop.f32.mrf.mxu1 }
 0x135   : > { %v4364_v45 = vadd.f32 %v3219_v44, %v1011_v28  ;;  %v1003_v25 = vadd.f32 %v1002_v52, %v4230_v34 }
 0x136   : > { %v3223_v46 = vpop.f32.mrf.mxu0  ;;  %3426 = vmatmul.mubr.msk.bf16.gmra.mxu0 %vm704_vm1, %v4011_v17  ;;  %v3186_v8 = vpop.f32.mrf.mxu1 }
 0x137   : > { %3429 = vmatprep.mubr.msk.bf16.mxu0 %vm704_vm1, %v4016_v24  ;;  %v4371_v56 = vadd.f32 %v1300_v62, %v1003_v25  ;;  %v1014_v53 = vadd.f32 %v3186_v8, %v4240_v29 }
 0x138   : > { %v1316_v4 = vpop.f32.mrf.mxu0  ;;  %v1005_v14 = vpop.f32.mrf.mxu1 }
 0x139   : > { %v4374_v1 = vadd.f32 %v3220_v40, %v1014_v53  ;;  %v1006_v32 = vadd.f32 %v1005_v14, %v4246_v22 }
 0x13a   : > { %v3224_v44 = vpop.f32.mrf.mxu0  ;;  %v3189_v34 = vpop.f32.mrf.mxu1  ;;  %3392 = vmatmul.mubr.msk.bf16.gmra.mxu1 %vm704_vm1, %v3928_v38 }
 0x13b   : > { %v4379_v17 = vadd.f32 %v1303_v60, %v1006_v32  ;;  %v1027_v58 = vadd.f32 %v3189_v34, %v4258_v13  ;;  %3395 = vmatprep.mubr.msk.bf16.mxu1 %vm704_vm1, %v3652_v19 }
 0x13c   : > { %v1319_v24 = vpop.f32.mrf.mxu0  ;;  %v1018_v29 = vpop.f32.mrf.mxu1 }
 0x13d   : > { %v4384_v62 = vadd.f32 %v3223_v46, %v1027_v58  ;;  %v1019_v61 = vadd.f32 %v1018_v29, %v4271_v33  ;;  %v288_v46 = vld [vmem:[%s3579_s30 + $0x1a8] sm:$0x3]  ;;  %s4726_s30 = scalar_lea.vmem %s4891_s4, %s2989_s27 }
 0x13e   : > { %v3227_v40 = vpop.f32.mrf.mxu0  ;;  %3430 = vmatmul.mubr.msk.bf16.gmra.mxu0 %vm704_vm1, %v4029_v2  ;;  %v3190_v22 = vpop.f32.mrf.mxu1 }
 0x13f   : > { %3433 = vmatprep.mubr.msk.bf16.mxu0 %vm704_vm1, %v4034_v37  ;;  %v4391_v38 = vadd.f32 %v1316_v4, %v1019_v61  ;;  %v1030_v13 = vadd.f32 %v3190_v22, %v4288_v54 }
 0x140   : > { %v1332_v43 = vpop.f32.mrf.mxu0  ;;  %v1021_v19 = vpop.f32.mrf.mxu1 }
 0x141   : > { %v4394_v28 = vadd.f32 %v3224_v44, %v1030_v13  ;;  %v1022_v60 = vadd.f32 %v1021_v19, %v4294_v57 }
 0x142   : > { %v3228_v33 = vpop.f32.mrf.mxu0  ;;  %v3193_v52 = vpop.f32.mrf.mxu1  ;;  %3396 = vmatmul.mubr.msk.bf16.gmra.mxu1 %vm704_vm1, %v3707_v10 }
 0x143   : > { %v4399_v2 = vadd.f32 %v1319_v24, %v1022_v60  ;;  %v1043_v25 = vadd.f32 %v3193_v52, %v4306_v35  ;;  %3399 = vmatprep.mubr.msk.bf16.mxu1 %vm704_vm1, %v3750_v59  ;;  %v349_v59 = vmul.f32 %v4263_v6, %v288_v46 }
 0x144   : > { %v1335_v37 = vpop.f32.mrf.mxu0  ;;  %v1034_v54 = vpop.f32.mrf.mxu1 }
 0x145   : > { %v4405_v8 = vadd.f32 %v3227_v40, %v1043_v25  ;;  %v1035_v53 = vadd.f32 %v1034_v54, %v4317_v5  ;;  %v410_v6 = vadd.f32 %v4276_v26, %v349_v59 }
 0x146   : > { %v3231_v57 = vpop.f32.mrf.mxu0  ;;  %3434 = vmatmul.mubr.msk.bf16.gmra.mxu0 %vm704_vm1, %v4047_v48  ;;  %v3194_v4 = vpop.f32.mrf.mxu1 }
 0x147   : > { %3437 = vmatprep.mubr.msk.bf16.mxu0 %vm704_vm1, %v4052_v31  ;;  %v4412_v10 = vadd.f32 %v1332_v43, %v1035_v53  ;;  %v1046_v35 = vadd.f32 %v3194_v4, %v4319_v27  ;;  %v464_v22 = vmax.f32 %v410_v6, 0.0 }
 0x148   : > { %v1348_v14 = vpop.f32.mrf.mxu0  ;;  %v1037_v32 = vpop.f32.mrf.mxu1 }
 0x149   : > { %v4416_v44 = vadd.f32 %v3228_v33, %v1046_v35  ;;  %v1038_v5 = vadd.f32 %v1037_v32, %v4325_v16  ;;  %v2277_v33 = vshll.u32 %v4296_v51, 16 }
 0x14a   : > { %v3232_v34 = vpop.f32.mrf.mxu0  ;;  %v3197_v58 = vpop.f32.mrf.mxu1  ;;  %3400 = vmatmul.mubr.msk.bf16.gmra.mxu1 %vm704_vm1, %v3793_v0 }
 0x14b   : > { %v4421_v48 = vadd.f32 %v1335_v37, %v1038_v5  ;;  %v1059_v31 = vadd.f32 %v3197_v58, %v4202_v39  ;;  %3403 = vmatprep.mubr.msk.bf16.mxu1 %vm704_vm1, %v3834_v15  ;;  %v2279_v4 = vrot.slane %v2277_v33, 1  ;;  %v4906_v5 = vld [vmem:[#allocation3_spill] sm:$0xff]  ;;  %v4907_v58 = vld [vmem:[#allocation2_spill] sm:$0xff] }
 0x14c   : > { %v1351_v24 = vpop.f32.mrf.mxu0  ;;  %v1050_v27 = vpop.f32.mrf.mxu1 }
 0x14d   : > { %v4427_v29 = vadd.f32 %v3231_v57, %v1059_v31  ;;  %v1051_v16 = vadd.f32 %v1050_v27, %v4212_v49 }
 0x14e   : > { %v3235_v61 = vpop.f32.mrf.mxu0  ;;  %3438 = vmatmul.mubr.msk.bf16.gmra.mxu0 %vm704_vm1, %v4065_v50  ;;  %v3198_v0 = vpop.f32.mrf.mxu1 }
 0x14f   : > { %3441 = vmatprep.mubr.msk.bf16.mxu0 %vm704_vm1, %v4070_v21  ;;  %v4434_v39 = vadd.f32 %v1348_v14, %v1051_v16  ;;  %v1062_v40 = vadd.f32 %v3198_v0, %v4218_v47  ;;  %v500_v47 = vpack.c.bf16 %v464_v22, %v464_v22 }
 0x150   : > { %v1364_v15 = vpop.f32.mrf.mxu0  ;;  %v1053_v26 = vpop.f32.mrf.mxu1 }
 0x151   : > { %v4437_v13 = vadd.f32 %v3232_v34, %v1062_v40  ;;  %v1054_v43 = vadd.f32 %v1053_v26, %v4228_v41  ;;  %v2493_v54 = vrot.slane %v500_v47, 1  ;;  %v4909_v40 = vld [vmem:[#allocation5_spill] sm:$0xff] }
 0x152   : > { %v3236_v49 = vpop.f32.mrf.mxu0  ;;  %v3201_v19 = vpop.f32.mrf.mxu1  ;;  %3404 = vmatmul.mubr.msk.bf16.gmra.mxu1 %vm704_vm1, %v4896_v3 }
 0x153   : > { %v4442_v50 = vadd.f32 %v1351_v24, %v1054_v43  ;;  %v1075_v21 = vadd.f32 %v3201_v19, %v4234_v63  ;;  %3407 = vmatprep.mubr.msk.bf16.mxu1 %vm704_vm1, %v3914_v23  ;;  %v2275_v63 = vshrl.u32 %v4296_v51, 16  ;;  %v2492_v23 = vrot.slane %v4296_v51, 1  ;;  %v4910_v19 = vld [vmem:[#allocation6_spill] sm:$0xff] }
 0x154   : > { %v1367_v60 = vpop.f32.mrf.mxu0  ;;  %v1066_v52 = vpop.f32.mrf.mxu1 }
 0x155   : > { %v4448_v25 = vadd.f32 %v3235_v61, %v1075_v21  ;;  %v1067_v41 = vadd.f32 %v1066_v52, %v4244_v11  ;;  %v2282_v11 = vshll.u32 %v500_v47, 16  ;;  %v2494_v51 = vsel %vm1145_vm2, %v2492_v23, %v2493_v54  ;;  %v4911_v52 = vld [vmem:[#allocation7_spill] sm:$0xff]  ;;  %v4912_v23 = vld [vmem:[#allocation8_spill] sm:$0xff] }
 0x156   : > { %v3239_v37 = vpop.f32.mrf.mxu0  ;;  %3442 = vmatmul.mubr.msk.bf16.gmra.mxu0 %vm704_vm1, %v4081_v18  ;;  %v3202_v3 = vpop.f32.mrf.mxu1  ;;  %v2280_v31 = vor.u32 %v2279_v4, %v2275_v63 }
 0x157   : > { %3445 = vmatprep.mubr.msk.bf16.mxu0 %vm704_vm1, %v4315_v9  ;;  %v4457_v46 = vadd.f32 %v1364_v15, %v1067_v41  ;;  %v1078_v53 = vadd.f32 %v3202_v3, %v4250_v42  ;;  %v2284_v24 = vrot.slane %v2282_v11, 1  ;;  %v4913_v11 = vld [vmem:[#allocation9_spill] sm:$0xff] }
 0x158   : > { %v1380_v57 = vpop.f32.mrf.mxu0  ;;  %v1069_v35 = vpop.f32.mrf.mxu1 }
 0x159   : > { %v4460_v14 = vadd.f32 %v3236_v49, %v1078_v53  ;;  %v1070_v18 = vadd.f32 %v1069_v35, %v4267_v12  ;;  %v4908_v12 = vld [vmem:[#allocation4_spill] sm:$0xff]  ;;  %v2285_v22 = vsel %vm503_vm0, %v2280_v31, %v2284_v24 }
 0x15a   : > { %v3240_v59 = vpop.f32.mrf.mxu0  ;;  %v3205_v32 = vpop.f32.mrf.mxu1  ;;  %3408 = vmatmul.mubr.msk.bf16.gmra.mxu1 %vm704_vm1, %v3938_v7 }
 0x15b   : > { %v4466_v9 = vadd.f32 %v1367_v60, %v1070_v18  ;;  %v1091_v34 = vadd.f32 %v3205_v32, %v4906_v5  ;;  %3411 = vmatprep.mubr.msk.bf16.mxu1 %vm704_vm1, %v4907_v58 }
 0x15c   : > { %v1383_v42 = vpop.f32.mrf.mxu0  ;;  %v1082_v6 = vpop.f32.mrf.mxu1 }
 0x15d   : > { %v4471_v27 = vadd.f32 %v3239_v37, %v1091_v34  ;;  %v1083_v16 = vadd.f32 %v1082_v6, %v4908_v12 }
 0x15e   : > { %v3243_v61 = vpop.f32.mrf.mxu0  ;;  %3446 = vmatmul.mubr.msk.bf16.gmra.mxu0 %vm704_vm1, %v2494_v51  ;;  %v3206_v7 = vpop.f32.mrf.mxu1  ;;  %v4914_v51 = vld [vmem:[#allocation10_spill] sm:$0xff] }
 0x15f   : > { %v4475_v0 = vadd.f32 %v1380_v57, %v1083_v16  ;;  %v1094_v15 = vadd.f32 %v3206_v7, %v4909_v40 }
 0x160   : > { %v1396_v26 = vpop.f32.mrf.mxu0  ;;  %v1085_v43 = vpop.f32.mrf.mxu1 }
 0x161   : > { %v4479_v49 = vadd.f32 %v3240_v59, %v1094_v15  ;;  %v1086_v21 = vadd.f32 %v1085_v43, %v4910_v19 }
 0x162   : > { %v3244_v60 = vpop.f32.mrf.mxu0  ;;  %v3209_v47 = vpop.f32.mrf.mxu1  ;;  %3412 = vmatmul.mubr.msk.bf16.gmra.mxu1 %vm704_vm1, %v2285_v22 }
 0x163   : > { %v4483_v33 = vadd.f32 %v1383_v42, %v1086_v21  ;;  %v1107_v41 = vadd.f32 %v3209_v47, %v4911_v52 }
 0x164   : > { %v1399_v37 = vpop.f32.mrf.mxu0  ;;  %v1098_v3 = vpop.f32.mrf.mxu1 }
 0x165   : > { %v4486_v63 = vadd.f32 %v3243_v61, %v1107_v41  ;;  %v1099_v54 = vadd.f32 %v1098_v3, %v4912_v23 }
 0x166   : > { %v3283_v53 = vpop.f32.mrf.mxu0  ;;  %v3210_v57 = vpop.f32.mrf.mxu1 }
 0x167   : > { %v4489_v4 = vadd.f32 %v1396_v26, %v1099_v54  ;;  %v1110_v35 = vadd.f32 %v3210_v57, %v4913_v11 }
 0x168   : > { %v1703_v18 = vpop.f32.mrf.mxu0  ;;  %v1101_v59 = vpop.f32.mrf.mxu1 }
 0x169   : > { %v4492_v32 = vadd.f32 %v3244_v60, %v1110_v35  ;;  %v1102_v5 = vadd.f32 %v1101_v59, %v4914_v51 }
 0x16a   : > { %v3284_v34 = vpop.f32.mrf.mxu0  ;;  %v3249_v42 = vpop.f32.mrf.mxu1 }
 0x16b   : > { %v4495_v58 = vadd.f32 %v1399_v37, %v1102_v5  ;;  %v1617_v31 = vadd.f32 %v3249_v42, %v4344_v20 }
 0x16c   : > { %v1706_v24 = vpop.f32.mrf.mxu0  ;;  %v1488_v6 = vpop.f32.mrf.mxu1 }
 0x16d   : > { %v4498_v12 = vadd.f32 %v3283_v53, %v1617_v31  ;;  %v1615_v16 = vadd.f32 %v1488_v6, %v4351_v30 }
 0x16e   : > { %v3287_v61 = vpop.f32.mrf.mxu0  ;;  %v3250_v7 = vpop.f32.mrf.mxu1 }
 0x16f   : > { %v4501_v40 = vadd.f32 %v1703_v18, %v1615_v16  ;;  %v1618_v15 = vadd.f32 %v3250_v7, %v4354_v36 }
 0x170   : > { %v1719_v22 = vpop.f32.mrf.mxu0  ;;  %v1491_v26 = vpop.f32.mrf.mxu1 }
 0x171   : > { %v4504_v43 = vadd.f32 %v3284_v34, %v1618_v15  ;;  %v1616_v19 = vadd.f32 %v1491_v26, %v4359_v55 }
 0x172   : > { %v3288_v21 = vpop.f32.mrf.mxu0  ;;  %v3253_v20 = vpop.f32.mrf.mxu1 }
 0x173   : > { %v4507_v60 = vadd.f32 %v1706_v24, %v1616_v19  ;;  %v1621_v47 = vadd.f32 %v3253_v20, %v4364_v45 }
 0x174   : > { %v1722_v52 = vpop.f32.mrf.mxu0  ;;  %v1504_v30 = vpop.f32.mrf.mxu1 }
 0x175   : > { %v4510_v41 = vadd.f32 %v3287_v61, %v1621_v47  ;;  %v1619_v37 = vadd.f32 %v1504_v30, %v4371_v56 }
 0x176   : > { %v3291_v3 = vpop.f32.mrf.mxu0  ;;  %v3254_v36 = vpop.f32.mrf.mxu1 }
 0x177   : > { %v4513_v23 = vadd.f32 %v1719_v22, %v1619_v37  ;;  %v1622_v54 = vadd.f32 %v3254_v36, %v4374_v1 }
 0x178   : > { %v1735_v53 = vpop.f32.mrf.mxu0  ;;  %v1507_v55 = vpop.f32.mrf.mxu1 }
 0x179   : > { %v4516_v57 = vadd.f32 %v3288_v21, %v1622_v54  ;;  %v1620_v11 = vadd.f32 %v1507_v55, %v4379_v17 }
 0x17a   : > { %v3292_v35 = vpop.f32.mrf.mxu0  ;;  %v3257_v45 = vpop.f32.mrf.mxu1 }
 0x17b   : > { %v4519_v18 = vadd.f32 %v1722_v52, %v1620_v11  ;;  %v1625_v59 = vadd.f32 %v3257_v45, %v4384_v62 }
 0x17c   : > { %v1738_v51 = vpop.f32.mrf.mxu0  ;;  %v1520_v56 = vpop.f32.mrf.mxu1 }
 0x17d   : > { %v4522_v5 = vadd.f32 %v3291_v3, %v1625_v59  ;;  %v1623_v34 = vadd.f32 %v1520_v56, %v4391_v38 }
 0x17e   : > { %v3295_v42 = vpop.f32.mrf.mxu0  ;;  %v3258_v1 = vpop.f32.mrf.mxu1 }
 0x17f   : > { %v4525_v31 = vadd.f32 %v1735_v53, %v1623_v34  ;;  %v1626_v24 = vadd.f32 %v3258_v1, %v4394_v28 }
 0x180   : > { %v1751_v6 = vpop.f32.mrf.mxu0  ;;  %v1523_v17 = vpop.f32.mrf.mxu1 }
 0x181   : > { %v4528_v16 = vadd.f32 %v3292_v35, %v1626_v24  ;;  %v1624_v61 = vadd.f32 %v1523_v17, %v4399_v2 }
 0x182   : > { %v3296_v7 = vpop.f32.mrf.mxu0  ;;  %v3261_v62 = vpop.f32.mrf.mxu1 }
 0x183   : > { %v4531_v15 = vadd.f32 %v1738_v51, %v1624_v61  ;;  %v1629_v22 = vadd.f32 %v3261_v62, %v4405_v8 }
 0x184   : > { %v1754_v26 = vpop.f32.mrf.mxu0  ;;  %v1536_v38 = vpop.f32.mrf.mxu1 }
 0x185   : > { %v4534_v19 = vadd.f32 %v3295_v42, %v1629_v22  ;;  %v1627_v21 = vadd.f32 %v1536_v38, %v4412_v10 }
 0x186   : > { %v3299_v20 = vpop.f32.mrf.mxu0  ;;  %v3262_v28 = vpop.f32.mrf.mxu1 }
 0x187   : > { %v4537_v47 = vadd.f32 %v1751_v6, %v1627_v21  ;;  %v1630_v52 = vadd.f32 %v3262_v28, %v4416_v44 }
 0x188   : > { %v1767_v30 = vpop.f32.mrf.mxu0  ;;  %v1539_v2 = vpop.f32.mrf.mxu1 }
 0x189   : > { %v4540_v37 = vadd.f32 %v3296_v7, %v1630_v52  ;;  %v1628_v3 = vadd.f32 %v1539_v2, %v4421_v48 }
 0x18a   : > { %v3300_v36 = vpop.f32.mrf.mxu0  ;;  %v3265_v8 = vpop.f32.mrf.mxu1 }
 0x18b   : > { %v4543_v54 = vadd.f32 %v1754_v26, %v1628_v3  ;;  %v1633_v53 = vadd.f32 %v3265_v8, %v4427_v29 }
 0x18c   : > { %v1770_v55 = vpop.f32.mrf.mxu0  ;;  %v1552_v10 = vpop.f32.mrf.mxu1 }
 0x18d   : > { %v4546_v11 = vadd.f32 %v3299_v20, %v1633_v53  ;;  %v1631_v35 = vadd.f32 %v1552_v10, %v4434_v39 }
 0x18e   : > { %v3303_v45 = vpop.f32.mrf.mxu0  ;;  %v3266_v44 = vpop.f32.mrf.mxu1 }
 0x18f   : > { %v4549_v59 = vadd.f32 %v1767_v30, %v1631_v35  ;;  %v1634_v51 = vadd.f32 %v3266_v44, %v4437_v13 }
 0x190   : > { %v1783_v56 = vpop.f32.mrf.mxu0  ;;  %v1555_v48 = vpop.f32.mrf.mxu1 }
 0x191   : > { %v4552_v34 = vadd.f32 %v3300_v36, %v1634_v51  ;;  %v1632_v42 = vadd.f32 %v1555_v48, %v4442_v50 }
 0x192   : > { %v3304_v1 = vpop.f32.mrf.mxu0  ;;  %v3269_v29 = vpop.f32.mrf.mxu1 }
 0x193   : > { %4915 = vst [vmem:[#allocation3_spill] sm:$0xff] %v4552_v34  ;;  %v4555_v24 = vadd.f32 %v1770_v55, %v1632_v42  ;;  %v1637_v6 = vadd.f32 %v3269_v29, %v4448_v25 }
 0x194   : > { %v1786_v17 = vpop.f32.mrf.mxu0  ;;  %v1568_v39 = vpop.f32.mrf.mxu1 }
 0x195   : > { %4916 = vst [vmem:[#allocation2_spill] sm:$0xff] %v4555_v24  ;;  %v4558_v61 = vadd.f32 %v3303_v45, %v1637_v6  ;;  %v1635_v7 = vadd.f32 %v1568_v39, %v4457_v46 }
 0x196   : > { %v3307_v62 = vpop.f32.mrf.mxu0  ;;  %v3270_v13 = vpop.f32.mrf.mxu1 }
 0x197   : > { %4917 = vst [vmem:[#allocation4_spill] sm:$0xff] %v4558_v61  ;;  %v4561_v22 = vadd.f32 %v1783_v56, %v1635_v7  ;;  %v1638_v26 = vadd.f32 %v3270_v13, %v4460_v14 }
 0x198   : > { %v1799_v38 = vpop.f32.mrf.mxu0  ;;  %v1571_v50 = vpop.f32.mrf.mxu1 }
 0x199   : > { %4918 = vst [vmem:[#allocation5_spill] sm:$0xff] %v4561_v22  ;;  %v4564_v21 = vadd.f32 %v3304_v1, %v1638_v26  ;;  %v1636_v20 = vadd.f32 %v1571_v50, %v4466_v9 }
 0x19a   : > { %v3308_v28 = vpop.f32.mrf.mxu0  ;;  %v3273_v25 = vpop.f32.mrf.mxu1 }
 0x19b   : > { %4919 = vst [vmem:[#allocation6_spill] sm:$0xff] %v4564_v21  ;;  %v4567_v52 = vadd.f32 %v1786_v17, %v1636_v20  ;;  %v1641_v30 = vadd.f32 %v3273_v25, %v4471_v27 }
 0x19c   : > { %v1802_v2 = vpop.f32.mrf.mxu0  ;;  %v1584_v46 = vpop.f32.mrf.mxu1 }
 0x19d   : > { %4920 = vst [vmem:[#allocation7_spill] sm:$0xff] %v4567_v52  ;;  %v4570_v3 = vadd.f32 %v3307_v62, %v1641_v30  ;;  %v1639_v36 = vadd.f32 %v1584_v46, %v4475_v0 }
 0x19e   : > { %v3311_v8 = vpop.f32.mrf.mxu0  ;;  %v3274_v14 = vpop.f32.mrf.mxu1 }
 0x19f   : > { %4921 = vst [vmem:[#allocation8_spill] sm:$0xff] %v4570_v3  ;;  %v4573_v53 = vadd.f32 %v1799_v38, %v1639_v36  ;;  %v1642_v55 = vadd.f32 %v3274_v14, %v4479_v49 }
 0x1a0   : > { %v1815_v10 = vpop.f32.mrf.mxu0  ;;  %v1587_v9 = vpop.f32.mrf.mxu1 }
 0x1a1   : > { %4922 = vst [vmem:[#allocation9_spill] sm:$0xff] %v4573_v53  ;;  %v4576_v35 = vadd.f32 %v3308_v28, %v1642_v55  ;;  %v1640_v45 = vadd.f32 %v1587_v9, %v4483_v33 }
 0x1a2   : > { %v3312_v44 = vpop.f32.mrf.mxu0  ;;  %v3277_v27 = vpop.f32.mrf.mxu1 }
 0x1a3   : > { %4923 = vst [vmem:[#allocation10_spill] sm:$0xff] %v4576_v35  ;;  %v4579_v51 = vadd.f32 %v1802_v2, %v1640_v45  ;;  %v1645_v56 = vadd.f32 %v3277_v27, %v4486_v63 }
 0x1a4   : > { %v1818_v48 = vpop.f32.mrf.mxu0  ;;  %v1600_v0 = vpop.f32.mrf.mxu1 }
 0x1a5   : > { %4924 = vst [vmem:[#allocation11_spill] sm:$0xff] %v4579_v51  ;;  %v4582_v42 = vadd.f32 %v3311_v8, %v1645_v56  ;;  %v1643_v1 = vadd.f32 %v1600_v0, %v4489_v4 }
 0x1a6   : > { %v4585_v29 = vpop.f32.mrf.mxu0  ;;  %v3278_v49 = vpop.f32.mrf.mxu1 }
 0x1a7   : > { %4925 = vst [vmem:[#allocation12_spill] sm:$0xff] %v4582_v42  ;;  %v4587_v6 = vadd.f32 %v1815_v10, %v1643_v1  ;;  %v1646_v17 = vadd.f32 %v3278_v49, %v4492_v32 }
 0x1a8   : > { %v4590_v33 = vpop.f32.mrf.mxu0  ;;  %v1603_v39 = vpop.f32.mrf.mxu1 }
 0x1a9   : > { %4926 = vst [vmem:[#allocation13_spill] sm:$0xff] %v4587_v6  ;;  %v4592_v7 = vadd.f32 %v3312_v44, %v1646_v17  ;;  %v1644_v63 = vadd.f32 %v1603_v39, %v4495_v58 }
 0x1aa   : > { %v4595_v62 = vpop.f32.mrf.mxu0  ;;  %v3317_v13 = vpop.f32.mrf.mxu1 }
 0x1ab   : > { %4927 = vst [vmem:[#allocation14_spill] sm:$0xff] %v4592_v7  ;;  %v4597_v26 = vadd.f32 %v1818_v48, %v1644_v63 }
 0x1ac   : > { %v4599_v4 = vpop.f32.mrf.mxu0  ;;  %v1912_v38 = vpop.f32.mrf.mxu1 }
 0x1ad   : > { %4928 = vst [vmem:[#allocation15_spill] sm:$0xff] %v4597_v26 }
 0x1ae   : > { %v4601_v50 = vpop.f32.mrf.mxu0  ;;  %v3318_v20 = vpop.f32.mrf.mxu1 }
 0x1b0   : > { %v4603_v28 = vpop.f32.mrf.mxu0  ;;  %v4605_v32 = vpop.f32.mrf.mxu1 }
 0x1b2   : > { %v4607_v25 = vpop.f32.mrf.mxu0  ;;  %v4609_v30 = vpop.f32.mrf.mxu1 }
 0x1b4   : > { %v4611_v58 = vpop.f32.mrf.mxu0  ;;  %v4613_v2 = vpop.f32.mrf.mxu1 }
 0x1b6   : > { %v4615_v46 = vpop.f32.mrf.mxu0  ;;  %v4617_v36 = vpop.f32.mrf.mxu1 }
 0x1b8   : > { %v4619_v8 = vpop.f32.mrf.mxu0  ;;  %v4621_v14 = vpop.f32.mrf.mxu1 }
 0x1ba   : > { %v4623_v55 = vpop.f32.mrf.mxu0  ;;  %v4625_v10 = vpop.f32.mrf.mxu1 }
 0x1bc   : > { %v4627_v9 = vpop.f32.mrf.mxu0  ;;  %v4629_v45 = vpop.f32.mrf.mxu1 }
 0x1be   : > { %v4631_v44 = vpop.f32.mrf.mxu0  ;;  %v4633_v27 = vpop.f32.mrf.mxu1 }
 0x1c0   : > { %v4635_v56 = vpop.f32.mrf.mxu0  ;;  %v4637_v48 = vpop.f32.mrf.mxu1 }
 0x1c2   : > { %v4639_v0 = vpop.f32.mrf.mxu0  ;;  %v4641_v1 = vpop.f32.mrf.mxu1 }
 0x1c4   : > { %v4643_v49 = vpop.f32.mrf.mxu0  ;;  %v4645_v17 = vpop.f32.mrf.mxu1 }
 0x1c6   : > { %v4647_v39 = vpop.f32.mrf.mxu0  ;;  %v4649_v63 = vpop.f32.mrf.mxu1 }
 0x1c7   : > { %4929 = vst [vmem:[#allocation16_spill] sm:$0xff] %v4647_v39 }
 0x1c8   : > { %v4651_v26 = vpop.f32.mrf.mxu0  ;;  %v4653_v7 = vpop.f32.mrf.mxu1 }
 0x1c9   : > { %4930 = vst [vmem:[#allocation17_spill] sm:$0xff] %v4651_v26 }
 0x1ca   : > { %v4655_v6 = vpop.f32.mrf.mxu0  ;;  %v4657_v42 = vpop.f32.mrf.mxu1 }
 0x1cb   : > { %4931 = vst [vmem:[#allocation18_spill] sm:$0xff] %v4655_v6 }
 0x1cc   : > { %v4659_v51 = vpop.f32.mrf.mxu0  ;;  %v4661_v35 = vpop.f32.mrf.mxu1 }
 0x1cd   : > { %4932 = vst [vmem:[#allocation19_spill] sm:$0xff] %v4659_v51 }
 0x1ce   : > { %v4663_v53 = vpop.f32.mrf.mxu0  ;;  %v4665_v3 = vpop.f32.mrf.mxu1 }
 0x1cf   : > { %4933 = vst [vmem:[#allocation20_spill] sm:$0xff] %v4663_v53  ;;  %4934 = vst [vmem:[#allocation21_spill] sm:$0xff] %v4665_v3 }
 0x1d0   : > { %v4667_v52 = vpop.f32.mrf.mxu0  ;;  %v4669_v21 = vpop.f32.mrf.mxu1 }
 0x1d1   : > { %4935 = vst [vmem:[#allocation22_spill] sm:$0xff] %v4667_v52  ;;  %4936 = vst [vmem:[#allocation23_spill] sm:$0xff] %v4669_v21 }
 0x1d2   : > { %v4671_v22 = vpop.f32.mrf.mxu0  ;;  %v4673_v61 = vpop.f32.mrf.mxu1 }
 0x1d3   : > { %4937 = vst [vmem:[#allocation24_spill] sm:$0xff] %v4671_v22  ;;  %4938 = vst [vmem:[#allocation25_spill] sm:$0xff] %v4673_v61 }
 0x1d4   : > { %v4675_v24 = vpop.f32.mrf.mxu0  ;;  %v4677_v6 = vpop.f32.mrf.mxu1 }
 0x1d5   : > { %4939 = vst [vmem:[#allocation26_spill] sm:$0xff] %v4675_v24  ;;  %4940 = vst [vmem:[#allocation27_spill] sm:$0xff] %v4677_v6 }
 0x1d6   : > { %v4679_v26 = vpop.f32.mrf.mxu0  ;;  %v4681_v51 = vpop.f32.mrf.mxu1 }
 0x1d7   : > { %4941 = vst [vmem:[#allocation28_spill] sm:$0xff] %v4679_v26  ;;  %4942 = vst [vmem:[#allocation29_spill] sm:$0xff] %v4681_v51 }
 0x1d8   : > { %v4683_v34 = vpop.f32.mrf.mxu0  ;;  %v4685_v53 = vpop.f32.mrf.mxu1 }
 0x1d9   : > { %4943 = vst [vmem:[#allocation30_spill] sm:$0xff] %v4683_v34  ;;  %4944 = vst [vmem:[#allocation31_spill] sm:$0xff] %v4685_v53 }
 0x1da   : > { %v4687_v3 = vpop.f32.mrf.mxu0  ;;  %v4689_v52 = vpop.f32.mrf.mxu1 }
 0x1db   : > { %4945 = vst [vmem:[#allocation32_spill] sm:$0xff] %v4687_v3  ;;  %4946 = vst [vmem:[#allocation33_spill] sm:$0xff] %v4689_v52 }
 0x1dc   : > { %v4691_v21 = vpop.f32.mrf.mxu0  ;;  %v4693_v22 = vpop.f32.mrf.mxu1 }
 0x1dd   : > { %4947 = vst [vmem:[#allocation34_spill] sm:$0xff] %v4691_v21  ;;  %4948 = vst [vmem:[#allocation35_spill] sm:$0xff] %v4693_v22  ;;  %v2041_v21 = vadd.f32 %v3317_v13, %v4498_v12  ;;  %v2040_v12 = vadd.f32 %v4605_v32, %v4507_v60 }
 0x1de   : > { %v4695_v61 = vpop.f32.mrf.mxu0  ;;  %v4697_v24 = vpop.f32.mrf.mxu1 }
 0x1df   : > { %4949 = vst [vmem:[#allocation36_spill] sm:$0xff] %v4695_v61  ;;  %4950 = vst [vmem:[#allocation37_spill] sm:$0xff] %v4697_v24  ;;  %v2039_v61 = vadd.f32 %v1912_v38, %v4501_v40 }
 0x1e0   : > { %v4699_v26 = vpop.f32.mrf.mxu0  ;;  %v4701_v51 = vpop.f32.mrf.mxu1 }
 0x1e1   : > { %4951 = vst [vmem:[#allocation38_spill] sm:$0xff] %v4699_v26  ;;  %4952 = vst [vmem:[#allocation39_spill] sm:$0xff] %v4701_v51  ;;  %v2245_v26 = vadd.f32 %v4585_v29, %v2041_v21  ;;  %v2045_v21 = vadd.f32 %v4609_v30, %v4510_v41  ;;  %v2046_v41 = vadd.f32 %v4617_v36, %v4516_v57 }
 0x1e2   : > { %v4703_v34 = vpop.f32.mrf.mxu0  ;;  %v4705_v53 = vpop.f32.mrf.mxu1 }
 0x1e3   : > { %4953 = vst [vmem:[#allocation40_spill] sm:$0xff] %v4703_v34  ;;  %4954 = vst [vmem:[#allocation41_spill] sm:$0xff] %v4705_v53  ;;  %v2042_v34 = vadd.f32 %v3318_v20, %v4504_v43  ;;  %v2250_v57 = vadd.f32 %v4607_v25, %v2046_v41 }
 0x1e4   : > { %v4707_v3 = vpop.f32.mrf.mxu0  ;;  %v4709_v52 = vpop.f32.mrf.mxu1 }
 0x1e5   : > { %4955 = vst [vmem:[#allocation42_spill] sm:$0xff] %v4707_v3  ;;  %4956 = vst [vmem:[#allocation43_spill] sm:$0xff] %v4709_v52  ;;  %v2243_v3 = vadd.f32 %v4590_v33, %v2039_v61  ;;  %v2246_v43 = vadd.f32 %v4595_v62, %v2042_v34  ;;  %v2249_v34 = vadd.f32 %v4601_v50, %v2045_v21 }
 0x1e6   : > { %v3419_v22 = vpop.f32.mrf.mxu0  ;;  %v4712_v6 = vpop.f32.mrf.mxu1 }
 0x1e8   : > { %v2540_v24 = vpop.f32.mrf.mxu0  ;;  %v4715_v39 = vpop.f32.mrf.mxu1 }
 0x1e9   : > { %4957 = vst [vmem:[#allocation44_spill] sm:$0xff] %v4715_v39 }
 0x1ea   : > { %v3420_v53 = vpop.f32.mrf.mxu0  ;;  %v3385_v51 = vpop.f32.mrf.mxu1 }
 0x1eb   : > { %v2460_v13 = vadd.f32 %v3385_v51, %v2245_v26  ;;  %v2244_v51 = vadd.f32 %v4599_v4, %v2040_v12  ;;  %v2043_v26 = vadd.f32 %v4613_v2, %v4513_v23 }
 0x1ec   : > { %v2543_v52 = vpop.f32.mrf.mxu0  ;;  %v2331_v40 = vpop.f32.mrf.mxu1 }
 0x1ed   : > { %v2669_v61 = vadd.f32 %v3419_v22, %v2460_v13  ;;  %v2458_v29 = vadd.f32 %v2331_v40, %v2243_v3  ;;  %v2247_v23 = vadd.f32 %v4603_v28, %v2043_v26 }
 0x1ee   : > { %v3423_v33 = vpop.f32.mrf.mxu0  ;;  %v3386_v60 = vpop.f32.mrf.mxu1 }
 0x1ef   : > { %2702 = vst.msk [vmem:[%s4726_s30 + $0x10] sm:$0xff] %vm2699_vm3, %v2669_v61  ;;  %v2667_v38 = vadd.f32 %v2540_v24, %v2458_v29  ;;  %v2461_v20 = vadd.f32 %v3386_v60, %v2246_v43  ;;  %v2044_v24 = vadd.f32 %v4621_v14, %v4519_v18 }
 0x1f0   : > { %v2556_v32 = vpop.f32.mrf.mxu0  ;;  %v2334_v39 = vpop.f32.mrf.mxu1 }
 0x1f1   : > { %2700 = vst.msk [vmem:[%s4726_s30] sm:$0xff] %vm2699_vm3, %v2667_v38  ;;  %v2670_v22 = vadd.f32 %v3420_v53, %v2461_v20  ;;  %v2459_v3 = vadd.f32 %v2334_v39, %v2244_v51  ;;  %v2049_v53 = vadd.f32 %v4625_v10, %v4522_v5  ;;  %v2248_v18 = vadd.f32 %v4611_v58, %v2044_v24 }
 0x1f2   : > { %v3424_v62 = vpop.f32.mrf.mxu0  ;;  %v3389_v4 = vpop.f32.mrf.mxu1  ;;  %v2050_v10 = vadd.f32 %v4633_v27, %v4528_v16  ;;  %v2053_v27 = vadd.f32 %v4641_v1, %v4534_v19  ;;  %v2054_v1 = vadd.f32 %v4649_v63, %v4540_v37  ;;  %v2057_v63 = vadd.f32 %v4657_v42, %v4546_v11  ;;  %v4959_v42 = vld [vmem:[#allocation3_spill] sm:$0xff] }
 0x1f3   : > { %2703 = vst.msk [vmem:[%s4726_s30 + $0x18] sm:$0xff] %vm2699_vm3, %v2670_v22  ;;  %v2668_v30 = vadd.f32 %v2543_v52, %v2459_v3  ;;  %v2464_v50 = vadd.f32 %v3389_v4, %v2249_v34  ;;  %v2047_v52 = vadd.f32 %v4629_v45, %v4525_v31  ;;  %v2253_v5 = vadd.f32 %v4615_v46, %v2049_v53 }
 0x1f4   : > { %v2559_v2 = vpop.f32.mrf.mxu0  ;;  %v2347_v12 = vpop.f32.mrf.mxu1  ;;  %v2048_v45 = vadd.f32 %v4637_v48, %v4531_v15  ;;  %v2254_v16 = vadd.f32 %v4623_v55, %v2050_v10  ;;  %v2051_v48 = vadd.f32 %v4645_v17, %v4537_v47  ;;  %v2257_v19 = vadd.f32 %v4631_v44, %v2053_v27 }
 0x1f5   : > { %2701 = vst.msk [vmem:[%s4726_s30 + $0x8] sm:$0xff] %vm2699_vm3, %v2668_v30  ;;  %v2673_v36 = vadd.f32 %v3423_v33, %v2464_v50  ;;  %v2462_v28 = vadd.f32 %v2347_v12, %v2247_v23  ;;  %v2251_v31 = vadd.f32 %v4619_v8, %v2047_v52  ;;  %v2052_v17 = vadd.f32 %v4653_v7, %v4543_v54 }
 0x1f6   : > { %v3427_v39 = vpop.f32.mrf.mxu0  ;;  %v3390_v13 = vpop.f32.mrf.mxu1  ;;  %v2252_v15 = vadd.f32 %v4627_v9, %v2048_v45  ;;  %v2255_v47 = vadd.f32 %v4635_v56, %v2051_v48  ;;  %v2258_v37 = vadd.f32 %v4639_v0, %v2054_v1  ;;  %v2055_v7 = vadd.f32 %v4661_v35, %v4549_v59  ;;  %v4962_v35 = vld [vmem:[#allocation2_spill] sm:$0xff] }
 0x1f7   : > { %2706 = vst.msk [vmem:[%s4726_s30 + $0x30] sm:$0xff] %vm2699_vm3, %v2673_v36  ;;  %v2671_v14 = vadd.f32 %v2556_v32, %v2462_v28  ;;  %v2465_v25 = vadd.f32 %v3390_v13, %v2250_v57  ;;  %v2256_v54 = vadd.f32 %v4643_v49, %v2052_v17  ;;  %v4958_v36 = vld [vmem:[#allocation16_spill] sm:$0xff]  ;;  %v4960_v28 = vld [vmem:[#allocation21_spill] sm:$0xff] }
 0x1f8   : > { %v2572_v40 = vpop.f32.mrf.mxu0  ;;  %v2350_v43 = vpop.f32.mrf.mxu1  ;;  %v2261_v11 = vadd.f32 %v4958_v36, %v2057_v63  ;;  %v4979_v36 = vld [vmem:[#allocation26_spill] sm:$0xff] }
 0x1f9   : > { %2704 = vst.msk [vmem:[%s4726_s30 + $0x20] sm:$0xff] %vm2699_vm3, %v2671_v14  ;;  %v2674_v21 = vadd.f32 %v3424_v62, %v2465_v25  ;;  %v2463_v58 = vadd.f32 %v2350_v43, %v2248_v18  ;;  %v4961_v14 = vld [vmem:[#allocation17_spill] sm:$0xff]  ;;  %v4963_v25 = vld [vmem:[#allocation23_spill] sm:$0xff] }
 0x1fa   : > { %v3428_v61 = vpop.f32.mrf.mxu0  ;;  %v3393_v29 = vpop.f32.mrf.mxu1  ;;  %v2259_v59 = vadd.f32 %v4961_v14, %v2055_v7  ;;  %v4982_v14 = vld [vmem:[#allocation28_spill] sm:$0xff] }
 0x1fb   : > { %2707 = vst.msk [vmem:[%s4726_s30 + $0x38] sm:$0xff] %vm2699_vm3, %v2674_v21  ;;  %v2672_v33 = vadd.f32 %v2559_v2, %v2463_v58  ;;  %v2468_v46 = vadd.f32 %v3393_v29, %v2253_v5  ;;  %v4964_v58 = vld [vmem:[#allocation18_spill] sm:$0xff]  ;;  %v4965_v29 = vld [vmem:[#allocation4_spill] sm:$0xff] }
 0x1fc   : > { %v2575_v60 = vpop.f32.mrf.mxu0  ;;  %v2363_v51 = vpop.f32.mrf.mxu1 }
 0x1fd   : > { %2705 = vst.msk [vmem:[%s4726_s30 + $0x28] sm:$0xff] %vm2699_vm3, %v2672_v33  ;;  %v2677_v26 = vadd.f32 %v3427_v39, %v2468_v46  ;;  %v2466_v8 = vadd.f32 %v2363_v51, %v2251_v31  ;;  %v2058_v39 = vadd.f32 %v4960_v28, %v4959_v42  ;;  %v4966_v31 = vld [vmem:[#allocation25_spill] sm:$0xff]  ;;  %v4981_v28 = vld [vmem:[#allocation35_spill] sm:$0xff] }
 0x1fe   : > { %v3431_v38 = vpop.f32.mrf.mxu0  ;;  %v3394_v20 = vpop.f32.mrf.mxu1  ;;  %v2061_v45 = vadd.f32 %v4966_v31, %v4965_v29  ;;  %v4980_v42 = vld [vmem:[#allocation9_spill] sm:$0xff]  ;;  %v4986_v29 = vld [vmem:[#allocation11_spill] sm:$0xff] }
 0x1ff   : > { %2710 = vst.msk [vmem:[%s4726_s30 + $0x50] sm:$0xff] %vm2699_vm3, %v2677_v26  ;;  %v2675_v32 = vadd.f32 %v2572_v40, %v2466_v8  ;;  %v2469_v55 = vadd.f32 %v3394_v20, %v2254_v16  ;;  %v2056_v40 = vadd.f32 %v4963_v25, %v4962_v35  ;;  %v4967_v16 = vld [vmem:[#allocation19_spill] sm:$0xff]  ;;  %v4968_v26 = vld [vmem:[#allocation5_spill] sm:$0xff]  ;;  %v4983_v35 = vld [vmem:[#allocation10_spill] sm:$0xff] }
 0x200   : > { %v2588_v34 = vpop.f32.mrf.mxu0  ;;  %v2366_v41 = vpop.f32.mrf.mxu1  ;;  %v4969_v8 = vld [vmem:[#allocation27_spill] sm:$0xff]  ;;  %v4984_v25 = vld [vmem:[#allocation37_spill] sm:$0xff] }
 0x201   : > { %2708 = vst.msk [vmem:[%s4726_s30 + $0x40] sm:$0xff] %vm2699_vm3, %v2675_v32  ;;  %v2678_v22 = vadd.f32 %v3428_v61, %v2469_v55  ;;  %v2467_v9 = vadd.f32 %v2366_v41, %v2252_v15  ;;  %v2262_v61 = vadd.f32 %v4964_v58, %v2058_v39  ;;  %v2260_v27 = vadd.f32 %v4967_v16, %v2056_v40  ;;  %v4970_v55 = vld [vmem:[#allocation20_spill] sm:$0xff]  ;;  %v4971_v41 = vld [vmem:[#allocation6_spill] sm:$0xff]  ;;  %v4987_v31 = vld [vmem:[#allocation39_spill] sm:$0xff] }
 0x202   : > { %v3432_v3 = vpop.f32.mrf.mxu0  ;;  %v3397_v62 = vpop.f32.mrf.mxu1  ;;  %v2063_v39 = vadd.f32 %v4981_v28, %v4980_v42  ;;  %v2066_v40 = vadd.f32 %v4984_v25, %v4983_v35  ;;  %v4985_v58 = vld [vmem:[#allocation30_spill] sm:$0xff]  ;;  %v4988_v16 = vld [vmem:[#allocation32_spill] sm:$0xff] }
 0x203   : > { %2711 = vst.msk [vmem:[%s4726_s30 + $0x58] sm:$0xff] %vm2699_vm3, %v2678_v22  ;;  %v2676_v4 = vadd.f32 %v2575_v60, %v2467_v9  ;;  %v2472_v44 = vadd.f32 %v3397_v62, %v2257_v19  ;;  %v4972_v19 = vld [vmem:[#allocation29_spill] sm:$0xff]  ;;  %v5000_v42 = vld [vmem:[#allocation42_spill] sm:$0xff] }
 0x204   : > { %v2591_v23 = vpop.f32.mrf.mxu0  ;;  %v2379_v24 = vpop.f32.mrf.mxu1  ;;  %v2062_v1 = vadd.f32 %v4972_v19, %v4971_v41  ;;  %v4992_v41 = vld [vmem:[#allocation13_spill] sm:$0xff]  ;;  %v4993_v19 = vld [vmem:[#allocation43_spill] sm:$0xff] }
 0x205   : > { %2709 = vst.msk [vmem:[%s4726_s30 + $0x48] sm:$0xff] %vm2699_vm3, %v2676_v4  ;;  %v2681_v30 = vadd.f32 %v3431_v38, %v2472_v44  ;;  %v2470_v56 = vadd.f32 %v2379_v24, %v2255_v47  ;;  %v2059_v38 = vadd.f32 %v4969_v8, %v4968_v26  ;;  %v4973_v47 = vld [vmem:[#allocation22_spill] sm:$0xff]  ;;  %v4974_v4 = vld [vmem:[#allocation7_spill] sm:$0xff]  ;;  %v4989_v26 = vld [vmem:[#allocation12_spill] sm:$0xff] }
 0x206   : > { %v3435_v50 = vpop.f32.mrf.mxu0  ;;  %v3398_v2 = vpop.f32.mrf.mxu1  ;;  %v4975_v44 = vld [vmem:[#allocation31_spill] sm:$0xff]  ;;  %v4990_v8 = vld [vmem:[#allocation41_spill] sm:$0xff] }
 0x207   : > { %2714 = vst.msk [vmem:[%s4726_s30 + $0x70] sm:$0xff] %vm2699_vm3, %v2681_v30  ;;  %v2679_v12 = vadd.f32 %v2588_v34, %v2470_v56  ;;  %v2473_v0 = vadd.f32 %v3398_v2, %v2258_v37  ;;  %v2265_v34 = vadd.f32 %v4970_v55, %v2061_v45  ;;  %v2263_v17 = vadd.f32 %v4973_v47, %v2059_v38  ;;  %v4976_v56 = vld [vmem:[#allocation24_spill] sm:$0xff]  ;;  %v4991_v55 = vld [vmem:[#allocation34_spill] sm:$0xff] }
 0x208   : > { %v2604_v57 = vpop.f32.mrf.mxu0  ;;  %v2382_v53 = vpop.f32.mrf.mxu1  ;;  %v4977_v2 = vld [vmem:[#allocation8_spill] sm:$0xff]  ;;  %v2064_v45 = vadd.f32 %v4987_v31, %v4986_v29  ;;  %v2069_v38 = vadd.f32 %v4990_v8, %v4989_v26 }
 0x209   : > { %2712 = vst.msk [vmem:[%s4726_s30 + $0x60] sm:$0xff] %vm2699_vm3, %v2679_v12  ;;  %v2682_v13 = vadd.f32 %v3432_v3, %v2473_v0  ;;  %v2471_v49 = vadd.f32 %v2382_v53, %v2256_v54  ;;  %v4978_v54 = vld [vmem:[#allocation33_spill] sm:$0xff] }
 0x20a   : > { %v3436_v18 = vpop.f32.mrf.mxu0  ;;  %v3401_v52 = vpop.f32.mrf.mxu1  ;;  %v2065_v7 = vadd.f32 %v4978_v54, %v4977_v2 }
 0x20b   : > { %2715 = vst.msk [vmem:[%s4726_s30 + $0x78] sm:$0xff] %vm2699_vm3, %v2682_v13  ;;  %v2680_v43 = vadd.f32 %v2591_v23, %v2471_v49  ;;  %v2476_v5 = vadd.f32 %v3401_v52, %v2261_v11  ;;  %v2060_v23 = vadd.f32 %v4975_v44, %v4974_v4 }
 0x20c   : > { %v2607_v10 = vpop.f32.mrf.mxu0  ;;  %v2395_v21 = vpop.f32.mrf.mxu1 }
 0x20d   : > { %2713 = vst.msk [vmem:[%s4726_s30 + $0x68] sm:$0xff] %vm2699_vm3, %v2680_v43  ;;  %v2685_v33 = vadd.f32 %v3435_v50, %v2476_v5  ;;  %v2474_v46 = vadd.f32 %v2395_v21, %v2259_v59  ;;  %v2266_v50 = vadd.f32 %v4976_v56, %v2062_v1  ;;  %v2264_v11 = vadd.f32 %v4979_v36, %v2060_v23  ;;  %v4997_v56 = vld [vmem:[#allocation15_spill] sm:$0xff] }
 0x20e   : > { %v3439_v60 = vpop.f32.mrf.mxu0  ;;  %v3402_v51 = vpop.f32.mrf.mxu1  ;;  %v2269_v59 = vadd.f32 %v4982_v14, %v2065_v7  ;;  %v2067_v1 = vadd.f32 %v4993_v19, %v4992_v41 }
 0x20f   : > { %2718 = vst.msk [vmem:[%s4726_s30 + $0x90] sm:$0xff] %vm2699_vm3, %v2685_v33  ;;  %v2683_v20 = vadd.f32 %v2604_v57, %v2474_v46  ;;  %v2477_v15 = vadd.f32 %v3402_v51, %v2262_v61  ;;  %v2267_v61 = vadd.f32 %v4985_v58, %v2063_v39 }
 0x210   : > { %v2620_v48 = vpop.f32.mrf.mxu0  ;;  %v2398_v32 = vpop.f32.mrf.mxu1 }
 0x211   : > { %2716 = vst.msk [vmem:[%s4726_s30 + $0x80] sm:$0xff] %vm2699_vm3, %v2683_v20  ;;  %v2686_v22 = vadd.f32 %v3436_v18, %v2477_v15  ;;  %v2475_v9 = vadd.f32 %v2398_v32, %v2260_v27  ;;  %v2270_v27 = vadd.f32 %v4988_v16, %v2066_v40 }
 0x212   : > { %v3440_v3 = vpop.f32.mrf.mxu0  ;;  %v3405_v62 = vpop.f32.mrf.mxu1 }
 0x213   : > { %2719 = vst.msk [vmem:[%s4726_s30 + $0x98] sm:$0xff] %vm2699_vm3, %v2686_v22  ;;  %v2684_v24 = vadd.f32 %v2607_v10, %v2475_v9  ;;  %v2480_v37 = vadd.f32 %v3405_v62, %v2265_v34  ;;  %v2268_v34 = vadd.f32 %v4991_v55, %v2064_v45  ;;  %v4994_v62 = vld [vmem:[#allocation36_spill] sm:$0xff] }
 0x214   : > { %v2623_v63 = vpop.f32.mrf.mxu0  ;;  %v2411_v30 = vpop.f32.mrf.mxu1  ;;  %v2273_v47 = vadd.f32 %v4994_v62, %v2069_v38 }
 0x215   : > { %2717 = vst.msk [vmem:[%s4726_s30 + $0x88] sm:$0xff] %vm2699_vm3, %v2684_v24  ;;  %v2689_v12 = vadd.f32 %v3439_v60, %v2480_v37  ;;  %v2478_v0 = vadd.f32 %v2411_v30, %v2263_v17  ;;  %v4995_v17 = vld [vmem:[#allocation14_spill] sm:$0xff] }
 0x216   : > { %v3443_v57 = vpop.f32.mrf.mxu0  ;;  %v3406_v53 = vpop.f32.mrf.mxu1  ;;  %v2070_v4 = vadd.f32 %v4712_v6, %v4995_v17 }
 0x217   : > { %2722 = vst.msk [vmem:[%s4726_s30 + $0xb0] sm:$0xff] %vm2699_vm3, %v2689_v12  ;;  %v2687_v13 = vadd.f32 %v2620_v48, %v2478_v0  ;;  %v2481_v49 = vadd.f32 %v3406_v53, %v2266_v50  ;;  %v4998_v50 = vld [vmem:[#allocation44_spill] sm:$0xff] }
 0x218   : > { %v2636_v18 = vpop.f32.mrf.mxu0  ;;  %v2414_v52 = vpop.f32.mrf.mxu1  ;;  %v2068_v2 = vadd.f32 %v4998_v50, %v4997_v56  ;;  %v4999_v0 = vld [vmem:[#allocation40_spill] sm:$0xff] }
 0x219   : > { %2720 = vst.msk [vmem:[%s4726_s30 + $0xa0] sm:$0xff] %vm2699_vm3, %v2687_v13  ;;  %v2690_v43 = vadd.f32 %v3440_v3, %v2481_v49  ;;  %v2479_v5 = vadd.f32 %v2414_v52, %v2264_v11  ;;  %v2274_v6 = vadd.f32 %v4999_v0, %v2070_v4 }
 0x21a   : > { %v3444_v10 = vpop.f32.mrf.mxu0  ;;  %v3409_v21 = vpop.f32.mrf.mxu1  ;;  %v2272_v28 = vadd.f32 %v5000_v42, %v2068_v2 }
 0x21b   : > { %2723 = vst.msk [vmem:[%s4726_s30 + $0xb8] sm:$0xff] %vm2699_vm3, %v2690_v43  ;;  %v2688_v33 = vadd.f32 %v2623_v63, %v2479_v5  ;;  %v2484_v46 = vadd.f32 %v3409_v21, %v2269_v59  ;;  %v4996_v63 = vld [vmem:[#allocation38_spill] sm:$0xff] }
 0x21c   : > { %v2639_v60 = vpop.f32.mrf.mxu0  ;;  %v2427_v51 = vpop.f32.mrf.mxu1  ;;  %v2271_v30 = vadd.f32 %v4996_v63, %v2067_v1 }
 0x21d   : > { %2721 = vst.msk [vmem:[%s4726_s30 + $0xa8] sm:$0xff] %vm2699_vm3, %v2688_v33  ;;  %v2693_v20 = vadd.f32 %v3443_v57, %v2484_v46  ;;  %v2482_v15 = vadd.f32 %v2427_v51, %v2267_v61 }
 0x21e   : > { %v3410_v48 = vpop.f32.mrf.mxu1  ;;  %v3447_v32 = vpop.f32.mrf.mxu0 }
 0x21f   : > { %2726 = vst.msk [vmem:[%s4726_s30 + $0xd0] sm:$0xff] %vm2699_vm3, %v2693_v20  ;;  %v2691_v22 = vadd.f32 %v2636_v18, %v2482_v15  ;;  %v2485_v9 = vadd.f32 %v3410_v48, %v2270_v27 }
 0x220   : > { %v2430_v3 = vpop.f32.mrf.mxu1  ;;  %v2652_v37 = vpop.f32.mrf.mxu0 }
 0x221   : > { %2724 = vst.msk [vmem:[%s4726_s30 + $0xc0] sm:$0xff] %vm2699_vm3, %v2691_v22  ;;  %v2694_v44 = vadd.f32 %v3444_v10, %v2485_v9  ;;  %v2483_v23 = vadd.f32 %v2430_v3, %v2268_v34 }
 0x222   : > { %v3413_v24 = vpop.f32.mrf.mxu1  ;;  %v3448_v11 = vpop.f32.mrf.mxu0 }
 0x223   : > { %2727 = vst.msk [vmem:[%s4726_s30 + $0xd8] sm:$0xff] %vm2699_vm3, %v2694_v44  ;;  %v2692_v54 = vadd.f32 %v2639_v60, %v2483_v23  ;;  %v2488_v7 = vadd.f32 %v3413_v24, %v2273_v47 }
 0x224   : > { %v2443_v12 = vpop.f32.mrf.mxu1  ;;  %v2655_v14 = vpop.f32.mrf.mxu0 }
 0x225   : > { %2725 = vst.msk [vmem:[%s4726_s30 + $0xc8] sm:$0xff] %vm2699_vm3, %v2692_v54  ;;  %v2697_v57 = vadd.f32 %v3447_v32, %v2488_v7  ;;  %v2486_v53 = vadd.f32 %v2443_v12, %v2271_v30 }
 0x226   : > { %v3414_v36 = vpop.f32.mrf.mxu1 }
 0x227   : > { %2730 = vst.msk [vmem:[%s4726_s30 + $0xf0] sm:$0xff] %vm2699_vm3, %v2697_v57  ;;  %v2695_v39 = vadd.f32 %v2652_v37, %v2486_v53  ;;  %v2489_v13 = vadd.f32 %v3414_v36, %v2274_v6 }
 0x228   : > { %v2446_v49 = vpop.f32.mrf.mxu1 }
 0x229   : > { %2728 = vst.msk [vmem:[%s4726_s30 + $0xe0] sm:$0xff] %vm2699_vm3, %v2695_v39  ;;  %v2698_v18 = vadd.f32 %v3448_v11, %v2489_v13  ;;  %v2487_v52 = vadd.f32 %v2446_v49, %v2272_v28 }
 0x22b   : > { %2731 = vst.msk [vmem:[%s4726_s30 + $0xf8] sm:$0xff] %vm2699_vm3, %v2698_v18  ;;  %v2696_v59 = vadd.f32 %v2655_v14, %v2487_v52 }
 0x22d   : > { %2729 = vst.msk [vmem:[%s4726_s30 + $0xe8] sm:$0xff] %vm2699_vm3, %v2696_v59 }
 0x22e PF: > { %s14_s17 = sadd.s32 1, %s3509_s17   ;;  %s5001_s15 = smov %s3505_s16 }
 0x22f   : > { %p11_p5 = scmp.ge.s32.totalorder %s14_s17, 4   ;;  %s5002_s16 = smov %s5004_s18 }
 0x231   :  { %13 = sbr.rel (!%p11_p5) target bundleno = 2 (0x2), region = 66 }

</bundles_post_ra>
